<compile_context>
chip_gen: v7x
topology: tpu7x:2x2x1
jax: 0.10.0
libtpu: 0.0.40
codegen_flags: <defaults>
</compile_context>

<pallas_src>
import jax
import jax.numpy as jnp
from jax.experimental import pallas as pl
from jax.experimental.pallas import tpu as pltpu


def _make_stacked_lstm_kernel(num_layers: int, seq_len: int, batch: int, hidden: int):
    """Kernel args: (x, wih0, [wih_rest], whh, bias, fcw, fcb, out)."""
    L, T, B, H = num_layers, seq_len, batch, hidden

    def kernel(*args):
        idx = 0
        x_ref = args[idx]; idx += 1                  # (T*B, F)   time-major, row = t*B + b
        wih0_ref = args[idx]; idx += 1               # (F, 4H)    pre-transposed, gates [i,f,o,g]
        wihr_ref = None
        if L > 1:
            wihr_ref = args[idx]; idx += 1           # (L-1, H, 4H)
        whh_ref = args[idx]; idx += 1                # (L, H, 4H)
        b_ref = args[idx]; idx += 1                  # (L, 1, 4H)  b_ih + b_hh
        fcw_ref = args[idx]; idx += 1                # (H, O)
        fcb_ref = args[idx]; idx += 1                # (1, O)
        out_ref = args[idx]                          # (B, O)

        xin = x_ref[...]                             # layer-0 input, whole sequence
        h_top = None
        for l in range(L):
            w_ih = wih0_ref[...] if l == 0 else wihr_ref[l - 1]
            w_hh = whh_ref[l]                        # loaded once; loop-invariant over T
            b = b_ref[l]

            # ---- batched input projection: one fat GEMM over the whole sequence ----
            # (T*B, in_l) @ (in_l, 4H) + b ; stays in registers (no scratch).
            gates = jnp.dot(xin.astype(w_ih.dtype), w_ih,
                            preferred_element_type=jnp.float32) + b

            last_layer = (l == L - 1)

            # ---- serial recurrence: one (B,H)@(H,4H) matmul per step ----
            # T is small and static -> complete unroll with static slices.
            h = jnp.zeros((B, H), jnp.float32)
            c = jnp.zeros((B, H), jnp.float32)
            hs = []
            for t in range(T):
                g = gates[t * B:(t + 1) * B, :] + jnp.dot(
                    h.astype(w_hh.dtype), w_hh, preferred_element_type=jnp.float32)
                # gate order is [i, f, o, g] (host-permuted):
                # one sigmoid covers lanes 0:3H, one tanh covers 3H:4H.
                sig = jax.nn.sigmoid(g[:, :3 * H])
                g_t = jnp.tanh(g[:, 3 * H:])
                i_g = sig[:, 0 * H:1 * H]
                f_g = sig[:, 1 * H:2 * H]
                o_g = sig[:, 2 * H:3 * H]
                c = f_g * c + i_g * g_t
                h = o_g * jnp.tanh(c)
                if not last_layer:                   # only needed to feed layer l+1
                    hs.append(h)
            if not last_layer:
                xin = jnp.concatenate(hs, axis=0)    # (T*B, H) next-layer input (registers)
            h_top = h

        # fc(x[:, -1, :]) : last-timestep hidden state of the top layer.
        out_ref[...] = (
            jnp.dot(h_top, fcw_ref[...], preferred_element_type=jnp.float32)
            + fcb_ref[...]
        )

    return kernel


def _permute_gates_ifog(w):
    """Permute PyTorch LSTM gate blocks [i, f, g, o] -> [i, f, o, g] along axis 0."""
    H = w.shape[0] // 4
    return jnp.concatenate([w[:2 * H], w[3 * H:], w[2 * H:3 * H]], axis=0)


def stacked_lstm_forward(x, params, *, matmul_dtype=jnp.float32):
    """x: (B, T, input_size) float32, batch_first (PyTorch convention).

    matmul_dtype: set to jnp.bfloat16 on v6e/v7x for MXU peak (f32 accumulation
    is kept inside the kernel either way; validate separately with a looser
    tolerance before using for perf numbers).
    """
    B, T, F = x.shape
    L = len(params["w_ih"])
    H = params["w_hh"][0].shape[1]              # PyTorch W_hh shape is (4H, H)
    O = params["fc_w"].shape[0]

    # Time-major flatten: row t*B + b  <->  (batch b, time t).
    x_tm = jnp.transpose(x, (1, 0, 2)).reshape(T * B, F).astype(matmul_dtype)

    # Host-side weight prep (glue, not the hot path): permute gate blocks to
    # [i,f,o,g], pre-transpose, fold biases, and pack per-layer weights into
    # stacked arrays so the pallas_call has few inputs.
    wih_t = [jnp.transpose(_permute_gates_ifog(w)).astype(matmul_dtype)
             for w in params["w_ih"]]                                      # (in_l, 4H)
    whh_t = jnp.stack([jnp.transpose(_permute_gates_ifog(w)).astype(matmul_dtype)
                       for w in params["w_hh"]])                           # (L, H, 4H)
    bias = jnp.stack([
        _permute_gates_ifog(bi + bh).reshape(1, -1).astype(jnp.float32)
        for bi, bh in zip(params["b_ih"], params["b_hh"])
    ])                                                                      # (L, 1, 4H)
    fcw_t = jnp.transpose(params["fc_w"]).astype(jnp.float32)               # (H, O)
    fcb = params["fc_b"].reshape(1, -1).astype(jnp.float32)                 # (1, O)

    inputs = [x_tm, wih_t[0]]
    if L > 1:
        inputs.append(jnp.stack(wih_t[1:]))                                 # (L-1, H, 4H)
    inputs += [whh_t, bias, fcw_t, fcb]

    vmem = pl.BlockSpec(memory_space=pltpu.MemorySpace.VMEM)
    kernel = _make_stacked_lstm_kernel(L, T, B, H)

    return pl.pallas_call(
        kernel,
        out_shape=jax.ShapeDtypeStruct((B, O), jnp.float32),
        in_specs=[vmem] * len(inputs),
        out_specs=vmem,
    )(*inputs)


def init_params(key, input_size, hidden_size, num_layers, output_size):
    """Deterministic init matching PyTorch shapes: W_ih (4H, in), W_hh (4H, H), b (4H,)."""
    params = {"w_ih": [], "w_hh": [], "b_ih": [], "b_hh": []}
    bound = 1.0 / jnp.sqrt(hidden_size)
    for l in range(num_layers):
        in_l = input_size if l == 0 else hidden_size
        key, k1, k2, k3, k4 = jax.random.split(key, 5)
        params["w_ih"].append(
            jax.random.uniform(k1, (4 * hidden_size, in_l), jnp.float32, -bound, bound))
        params["w_hh"].append(
            jax.random.uniform(k2, (4 * hidden_size, hidden_size), jnp.float32, -bound, bound))
        params["b_ih"].append(
            jax.random.uniform(k3, (4 * hidden_size,), jnp.float32, -bound, bound))
        params["b_hh"].append(
            jax.random.uniform(k4, (4 * hidden_size,), jnp.float32, -bound, bound))
    key, k5, k6 = jax.random.split(key, 3)
    params["fc_w"] = jax.random.uniform(k5, (output_size, hidden_size), jnp.float32, -bound, bound)
    params["fc_b"] = jax.random.uniform(k6, (output_size,), jnp.float32, -bound, bound)
    return params


def reference_forward(x, params):
    """Pure-JAX reference replicating torch.nn.LSTM (eval) + Linear on last step."""
    B, T, F = x.shape
    num_layers = len(params["w_ih"])
    H = params["w_hh"][0].shape[1]
    seq = x
    for l in range(num_layers):
        w_ih, w_hh = params["w_ih"][l], params["w_hh"][l]
        b = params["b_ih"][l] + params["b_hh"][l]
        h = jnp.zeros((B, H), jnp.float32)
        c = jnp.zeros((B, H), jnp.float32)
        outs = []
        for t in range(T):
            g = seq[:, t, :] @ w_ih.T + h @ w_hh.T + b
            i_g = jax.nn.sigmoid(g[:, 0 * H:1 * H])
            f_g = jax.nn.sigmoid(g[:, 1 * H:2 * H])
            g_g = jnp.tanh(g[:, 2 * H:3 * H])
            o_g = jax.nn.sigmoid(g[:, 3 * H:4 * H])
            c = f_g * c + i_g * g_g
            h = o_g * jnp.tanh(c)
            outs.append(h)
        seq = jnp.stack(outs, axis=1)
    return seq[:, -1, :] @ params["fc_w"].T + params["fc_b"]


if __name__ == "__main__":
    # Small shapes consistent with the module's forward:
    batch, seq_len, input_size = 2, 8, 4
    hidden_size, num_layers, output_size = 32, 2, 3

    key = jax.random.PRNGKey(0)
    kp, kx = jax.random.split(key)
    params = init_params(kp, input_size, hidden_size, num_layers, output_size)
    x = jax.random.normal(kx, (batch, seq_len, input_size), jnp.float32)

    out = stacked_lstm_forward(x, params)        # f32 matmuls -> tight check below
    out = jax.block_until_ready(out)

    ref = reference_forward(x, params)
    assert out.shape == (batch, output_size)
    assert bool(jnp.all(jnp.isfinite(out)))
    assert bool(jnp.allclose(out, ref, rtol=1e-4, atol=1e-4)), (out, ref)

    print("KERNEL_OK")
</pallas_src>

<mosaic_0001>
module attributes {stable_mosaic.version = 11 : i64} {
  func.func @kernel(%arg0: memref<16x4xf32, #tpu.memory_space<vmem>>, %arg1: memref<4x128xf32, #tpu.memory_space<vmem>>, %arg2: memref<1x32x128xf32, #tpu.memory_space<vmem>>, %arg3: memref<2x32x128xf32, #tpu.memory_space<vmem>>, %arg4: memref<2x1x128xf32, #tpu.memory_space<vmem>>, %arg5: memref<32x3xf32, #tpu.memory_space<vmem>>, %arg6: memref<1x3xf32, #tpu.memory_space<vmem>>, %arg7: memref<2x3xf32, #tpu.memory_space<vmem>>) attributes {dimension_semantics = [], scalar_prefetch = 0 : i64, scratch_operands = 0 : i64, tpu.core_type = #tpu.core_type<tc>} {
    %c0 = arith.constant 0 : index
    %c0_0 = arith.constant 0 : index
    %0 = vector.load %arg0[%c0, %c0_0] : memref<16x4xf32, #tpu.memory_space<vmem>>, vector<16x4xf32>
    %c0_1 = arith.constant 0 : index
    %c0_2 = arith.constant 0 : index
    %1 = vector.load %arg1[%c0_1, %c0_2] : memref<4x128xf32, #tpu.memory_space<vmem>>, vector<4x128xf32>
    %c0_3 = arith.constant 0 : index
    %c0_4 = arith.constant 0 : index
    %c0_5 = arith.constant 0 : index
    %2 = vector.load %arg3[%c0_3, %c0_4, %c0_5] : memref<2x32x128xf32, #tpu.memory_space<vmem>>, vector<1x32x128xf32>
    %3 = vector.shape_cast %2 : vector<1x32x128xf32> to vector<32x128xf32>
    %c0_6 = arith.constant 0 : index
    %c0_7 = arith.constant 0 : index
    %c0_8 = arith.constant 0 : index
    %4 = vector.load %arg4[%c0_6, %c0_7, %c0_8] : memref<2x1x128xf32, #tpu.memory_space<vmem>>, vector<1x1x128xf32>
    %5 = vector.shape_cast %4 : vector<1x1x128xf32> to vector<1x128xf32>
    %cst = arith.constant dense<0.000000e+00> : vector<16x128xf32>
    %6 = tpu.matmul %0, %1, %cst {dimension_numbers = #tpu.dot_dimension_numbers<[1], [0], [0], [1], [0, 0, 1, 1], [], []>} : vector<16x4xf32>, vector<4x128xf32>, vector<16x128xf32> -> vector<16x128xf32>
    %7 = vector.broadcast %5 : vector<1x128xf32> to vector<16x128xf32>
    %8 = arith.addf %6, %7 : vector<16x128xf32>
    %cst_9 = arith.constant 0.000000e+00 : f32
    %9 = vector.broadcast %cst_9 : f32 to vector<2x32xf32>
    %cst_10 = arith.constant 0.000000e+00 : f32
    %10 = vector.broadcast %cst_10 : f32 to vector<2x32xf32>
    %11 = vector.extract_strided_slice %8 {offsets = [0, 0], sizes = [2, 128], strides = [1, 1]} : vector<16x128xf32> to vector<2x128xf32>
    %cst_11 = arith.constant dense<0.000000e+00> : vector<2x128xf32>
    %12 = tpu.matmul %9, %3, %cst_11 {dimension_numbers = #tpu.dot_dimension_numbers<[1], [0], [0], [1], [0, 0, 1, 1], [], []>} : vector<2x32xf32>, vector<32x128xf32>, vector<2x128xf32> -> vector<2x128xf32>
    %13 = arith.addf %11, %12 : vector<2x128xf32>
    %14 = vector.extract_strided_slice %13 {offsets = [0, 0], sizes = [2, 96], strides = [1, 1]} : vector<2x128xf32> to vector<2x96xf32>
    %15 = arith.negf %14 : vector<2x96xf32>
    %16 = math.exp %15 : vector<2x96xf32>
    %cst_12 = arith.constant 1.000000e+00 : f32
    %17 = vector.broadcast %cst_12 : f32 to vector<2x96xf32>
    %18 = arith.addf %17, %16 : vector<2x96xf32>
    %19 = arith.divf %17, %18 : vector<2x96xf32>
    %20 = vector.extract_strided_slice %13 {offsets = [0, 96], sizes = [2, 32], strides = [1, 1]} : vector<2x128xf32> to vector<2x32xf32>
    %21 = math.tanh %20 : vector<2x32xf32>
    %22 = vector.extract_strided_slice %19 {offsets = [0, 0], sizes = [2, 32], strides = [1, 1]} : vector<2x96xf32> to vector<2x32xf32>
    %23 = vector.extract_strided_slice %19 {offsets = [0, 32], sizes = [2, 32], strides = [1, 1]} : vector<2x96xf32> to vector<2x32xf32>
    %24 = vector.extract_strided_slice %19 {offsets = [0, 64], sizes = [2, 32], strides = [1, 1]} : vector<2x96xf32> to vector<2x32xf32>
    %25 = arith.mulf %23, %10 : vector<2x32xf32>
    %26 = arith.mulf %22, %21 : vector<2x32xf32>
    %27 = arith.addf %25, %26 : vector<2x32xf32>
    %28 = math.tanh %27 : vector<2x32xf32>
    %29 = arith.mulf %24, %28 : vector<2x32xf32>
    %30 = vector.extract_strided_slice %8 {offsets = [2, 0], sizes = [2, 128], strides = [1, 1]} : vector<16x128xf32> to vector<2x128xf32>
    %cst_13 = arith.constant dense<0.000000e+00> : vector<2x128xf32>
    %31 = tpu.matmul %29, %3, %cst_13 {dimension_numbers = #tpu.dot_dimension_numbers<[1], [0], [0], [1], [0, 0, 1, 1], [], []>} : vector<2x32xf32>, vector<32x128xf32>, vector<2x128xf32> -> vector<2x128xf32>
    %32 = arith.addf %30, %31 : vector<2x128xf32>
    %33 = vector.extract_strided_slice %32 {offsets = [0, 0], sizes = [2, 96], strides = [1, 1]} : vector<2x128xf32> to vector<2x96xf32>
    %34 = arith.negf %33 : vector<2x96xf32>
    %35 = math.exp %34 : vector<2x96xf32>
    %cst_14 = arith.constant 1.000000e+00 : f32
    %36 = vector.broadcast %cst_14 : f32 to vector<2x96xf32>
    %37 = arith.addf %36, %35 : vector<2x96xf32>
    %38 = arith.divf %36, %37 : vector<2x96xf32>
    %39 = vector.extract_strided_slice %32 {offsets = [0, 96], sizes = [2, 32], strides = [1, 1]} : vector<2x128xf32> to vector<2x32xf32>
    %40 = math.tanh %39 : vector<2x32xf32>
    %41 = vector.extract_strided_slice %38 {offsets = [0, 0], sizes = [2, 32], strides = [1, 1]} : vector<2x96xf32> to vector<2x32xf32>
    %42 = vector.extract_strided_slice %38 {offsets = [0, 32], sizes = [2, 32], strides = [1, 1]} : vector<2x96xf32> to vector<2x32xf32>
    %43 = vector.extract_strided_slice %38 {offsets = [0, 64], sizes = [2, 32], strides = [1, 1]} : vector<2x96xf32> to vector<2x32xf32>
    %44 = arith.mulf %42, %27 : vector<2x32xf32>
    %45 = arith.mulf %41, %40 : vector<2x32xf32>
    %46 = arith.addf %44, %45 : vector<2x32xf32>
    %47 = math.tanh %46 : vector<2x32xf32>
    %48 = arith.mulf %43, %47 : vector<2x32xf32>
    %49 = vector.extract_strided_slice %8 {offsets = [4, 0], sizes = [2, 128], strides = [1, 1]} : vector<16x128xf32> to vector<2x128xf32>
    %cst_15 = arith.constant dense<0.000000e+00> : vector<2x128xf32>
    %50 = tpu.matmul %48, %3, %cst_15 {dimension_numbers = #tpu.dot_dimension_numbers<[1], [0], [0], [1], [0, 0, 1, 1], [], []>} : vector<2x32xf32>, vector<32x128xf32>, vector<2x128xf32> -> vector<2x128xf32>
    %51 = arith.addf %49, %50 : vector<2x128xf32>
    %52 = vector.extract_strided_slice %51 {offsets = [0, 0], sizes = [2, 96], strides = [1, 1]} : vector<2x128xf32> to vector<2x96xf32>
    %53 = arith.negf %52 : vector<2x96xf32>
    %54 = math.exp %53 : vector<2x96xf32>
    %cst_16 = arith.constant 1.000000e+00 : f32
    %55 = vector.broadcast %cst_16 : f32 to vector<2x96xf32>
    %56 = arith.addf %55, %54 : vector<2x96xf32>
    %57 = arith.divf %55, %56 : vector<2x96xf32>
    %58 = vector.extract_strided_slice %51 {offsets = [0, 96], sizes = [2, 32], strides = [1, 1]} : vector<2x128xf32> to vector<2x32xf32>
    %59 = math.tanh %58 : vector<2x32xf32>
    %60 = vector.extract_strided_slice %57 {offsets = [0, 0], sizes = [2, 32], strides = [1, 1]} : vector<2x96xf32> to vector<2x32xf32>
    %61 = vector.extract_strided_slice %57 {offsets = [0, 32], sizes = [2, 32], strides = [1, 1]} : vector<2x96xf32> to vector<2x32xf32>
    %62 = vector.extract_strided_slice %57 {offsets = [0, 64], sizes = [2, 32], strides = [1, 1]} : vector<2x96xf32> to vector<2x32xf32>
    %63 = arith.mulf %61, %46 : vector<2x32xf32>
    %64 = arith.mulf %60, %59 : vector<2x32xf32>
    %65 = arith.addf %63, %64 : vector<2x32xf32>
    %66 = math.tanh %65 : vector<2x32xf32>
    %67 = arith.mulf %62, %66 : vector<2x32xf32>
    %68 = vector.extract_strided_slice %8 {offsets = [6, 0], sizes = [2, 128], strides = [1, 1]} : vector<16x128xf32> to vector<2x128xf32>
    %cst_17 = arith.constant dense<0.000000e+00> : vector<2x128xf32>
    %69 = tpu.matmul %67, %3, %cst_17 {dimension_numbers = #tpu.dot_dimension_numbers<[1], [0], [0], [1], [0, 0, 1, 1], [], []>} : vector<2x32xf32>, vector<32x128xf32>, vector<2x128xf32> -> vector<2x128xf32>
    %70 = arith.addf %68, %69 : vector<2x128xf32>
    %71 = vector.extract_strided_slice %70 {offsets = [0, 0], sizes = [2, 96], strides = [1, 1]} : vector<2x128xf32> to vector<2x96xf32>
    %72 = arith.negf %71 : vector<2x96xf32>
    %73 = math.exp %72 : vector<2x96xf32>
    %cst_18 = arith.constant 1.000000e+00 : f32
    %74 = vector.broadcast %cst_18 : f32 to vector<2x96xf32>
    %75 = arith.addf %74, %73 : vector<2x96xf32>
    %76 = arith.divf %74, %75 : vector<2x96xf32>
    %77 = vector.extract_strided_slice %70 {offsets = [0, 96], sizes = [2, 32], strides = [1, 1]} : vector<2x128xf32> to vector<2x32xf32>
    %78 = math.tanh %77 : vector<2x32xf32>
    %79 = vector.extract_strided_slice %76 {offsets = [0, 0], sizes = [2, 32], strides = [1, 1]} : vector<2x96xf32> to vector<2x32xf32>
    %80 = vector.extract_strided_slice %76 {offsets = [0, 32], sizes = [2, 32], strides = [1, 1]} : vector<2x96xf32> to vector<2x32xf32>
    %81 = vector.extract_strided_slice %76 {offsets = [0, 64], sizes = [2, 32], strides = [1, 1]} : vector<2x96xf32> to vector<2x32xf32>
    %82 = arith.mulf %80, %65 : vector<2x32xf32>
    %83 = arith.mulf %79, %78 : vector<2x32xf32>
    %84 = arith.addf %82, %83 : vector<2x32xf32>
    %85 = math.tanh %84 : vector<2x32xf32>
    %86 = arith.mulf %81, %85 : vector<2x32xf32>
    %87 = vector.extract_strided_slice %8 {offsets = [8, 0], sizes = [2, 128], strides = [1, 1]} : vector<16x128xf32> to vector<2x128xf32>
    %cst_19 = arith.constant dense<0.000000e+00> : vector<2x128xf32>
    %88 = tpu.matmul %86, %3, %cst_19 {dimension_numbers = #tpu.dot_dimension_numbers<[1], [0], [0], [1], [0, 0, 1, 1], [], []>} : vector<2x32xf32>, vector<32x128xf32>, vector<2x128xf32> -> vector<2x128xf32>
    %89 = arith.addf %87, %88 : vector<2x128xf32>
    %90 = vector.extract_strided_slice %89 {offsets = [0, 0], sizes = [2, 96], strides = [1, 1]} : vector<2x128xf32> to vector<2x96xf32>
    %91 = arith.negf %90 : vector<2x96xf32>
    %92 = math.exp %91 : vector<2x96xf32>
    %cst_20 = arith.constant 1.000000e+00 : f32
    %93 = vector.broadcast %cst_20 : f32 to vector<2x96xf32>
    %94 = arith.addf %93, %92 : vector<2x96xf32>
    %95 = arith.divf %93, %94 : vector<2x96xf32>
    %96 = vector.extract_strided_slice %89 {offsets = [0, 96], sizes = [2, 32], strides = [1, 1]} : vector<2x128xf32> to vector<2x32xf32>
    %97 = math.tanh %96 : vector<2x32xf32>
    %98 = vector.extract_strided_slice %95 {offsets = [0, 0], sizes = [2, 32], strides = [1, 1]} : vector<2x96xf32> to vector<2x32xf32>
    %99 = vector.extract_strided_slice %95 {offsets = [0, 32], sizes = [2, 32], strides = [1, 1]} : vector<2x96xf32> to vector<2x32xf32>
    %100 = vector.extract_strided_slice %95 {offsets = [0, 64], sizes = [2, 32], strides = [1, 1]} : vector<2x96xf32> to vector<2x32xf32>
    %101 = arith.mulf %99, %84 : vector<2x32xf32>
    %102 = arith.mulf %98, %97 : vector<2x32xf32>
    %103 = arith.addf %101, %102 : vector<2x32xf32>
    %104 = math.tanh %103 : vector<2x32xf32>
    %105 = arith.mulf %100, %104 : vector<2x32xf32>
    %106 = vector.extract_strided_slice %8 {offsets = [10, 0], sizes = [2, 128], strides = [1, 1]} : vector<16x128xf32> to vector<2x128xf32>
    %cst_21 = arith.constant dense<0.000000e+00> : vector<2x128xf32>
    %107 = tpu.matmul %105, %3, %cst_21 {dimension_numbers = #tpu.dot_dimension_numbers<[1], [0], [0], [1], [0, 0, 1, 1], [], []>} : vector<2x32xf32>, vector<32x128xf32>, vector<2x128xf32> -> vector<2x128xf32>
    %108 = arith.addf %106, %107 : vector<2x128xf32>
    %109 = vector.extract_strided_slice %108 {offsets = [0, 0], sizes = [2, 96], strides = [1, 1]} : vector<2x128xf32> to vector<2x96xf32>
    %110 = arith.negf %109 : vector<2x96xf32>
    %111 = math.exp %110 : vector<2x96xf32>
    %cst_22 = arith.constant 1.000000e+00 : f32
    %112 = vector.broadcast %cst_22 : f32 to vector<2x96xf32>
    %113 = arith.addf %112, %111 : vector<2x96xf32>
    %114 = arith.divf %112, %113 : vector<2x96xf32>
    %115 = vector.extract_strided_slice %108 {offsets = [0, 96], sizes = [2, 32], strides = [1, 1]} : vector<2x128xf32> to vector<2x32xf32>
    %116 = math.tanh %115 : vector<2x32xf32>
    %117 = vector.extract_strided_slice %114 {offsets = [0, 0], sizes = [2, 32], strides = [1, 1]} : vector<2x96xf32> to vector<2x32xf32>
    %118 = vector.extract_strided_slice %114 {offsets = [0, 32], sizes = [2, 32], strides = [1, 1]} : vector<2x96xf32> to vector<2x32xf32>
    %119 = vector.extract_strided_slice %114 {offsets = [0, 64], sizes = [2, 32], strides = [1, 1]} : vector<2x96xf32> to vector<2x32xf32>
    %120 = arith.mulf %118, %103 : vector<2x32xf32>
    %121 = arith.mulf %117, %116 : vector<2x32xf32>
    %122 = arith.addf %120, %121 : vector<2x32xf32>
    %123 = math.tanh %122 : vector<2x32xf32>
    %124 = arith.mulf %119, %123 : vector<2x32xf32>
    %125 = vector.extract_strided_slice %8 {offsets = [12, 0], sizes = [2, 128], strides = [1, 1]} : vector<16x128xf32> to vector<2x128xf32>
    %cst_23 = arith.constant dense<0.000000e+00> : vector<2x128xf32>
    %126 = tpu.matmul %124, %3, %cst_23 {dimension_numbers = #tpu.dot_dimension_numbers<[1], [0], [0], [1], [0, 0, 1, 1], [], []>} : vector<2x32xf32>, vector<32x128xf32>, vector<2x128xf32> -> vector<2x128xf32>
    %127 = arith.addf %125, %126 : vector<2x128xf32>
    %128 = vector.extract_strided_slice %127 {offsets = [0, 0], sizes = [2, 96], strides = [1, 1]} : vector<2x128xf32> to vector<2x96xf32>
    %129 = arith.negf %128 : vector<2x96xf32>
    %130 = math.exp %129 : vector<2x96xf32>
    %cst_24 = arith.constant 1.000000e+00 : f32
    %131 = vector.broadcast %cst_24 : f32 to vector<2x96xf32>
    %132 = arith.addf %131, %130 : vector<2x96xf32>
    %133 = arith.divf %131, %132 : vector<2x96xf32>
    %134 = vector.extract_strided_slice %127 {offsets = [0, 96], sizes = [2, 32], strides = [1, 1]} : vector<2x128xf32> to vector<2x32xf32>
    %135 = math.tanh %134 : vector<2x32xf32>
    %136 = vector.extract_strided_slice %133 {offsets = [0, 0], sizes = [2, 32], strides = [1, 1]} : vector<2x96xf32> to vector<2x32xf32>
    %137 = vector.extract_strided_slice %133 {offsets = [0, 32], sizes = [2, 32], strides = [1, 1]} : vector<2x96xf32> to vector<2x32xf32>
    %138 = vector.extract_strided_slice %133 {offsets = [0, 64], sizes = [2, 32], strides = [1, 1]} : vector<2x96xf32> to vector<2x32xf32>
    %139 = arith.mulf %137, %122 : vector<2x32xf32>
    %140 = arith.mulf %136, %135 : vector<2x32xf32>
    %141 = arith.addf %139, %140 : vector<2x32xf32>
    %142 = math.tanh %141 : vector<2x32xf32>
    %143 = arith.mulf %138, %142 : vector<2x32xf32>
    %144 = vector.extract_strided_slice %8 {offsets = [14, 0], sizes = [2, 128], strides = [1, 1]} : vector<16x128xf32> to vector<2x128xf32>
    %cst_25 = arith.constant dense<0.000000e+00> : vector<2x128xf32>
    %145 = tpu.matmul %143, %3, %cst_25 {dimension_numbers = #tpu.dot_dimension_numbers<[1], [0], [0], [1], [0, 0, 1, 1], [], []>} : vector<2x32xf32>, vector<32x128xf32>, vector<2x128xf32> -> vector<2x128xf32>
    %146 = arith.addf %144, %145 : vector<2x128xf32>
    %147 = vector.extract_strided_slice %146 {offsets = [0, 0], sizes = [2, 96], strides = [1, 1]} : vector<2x128xf32> to vector<2x96xf32>
    %148 = arith.negf %147 : vector<2x96xf32>
    %149 = math.exp %148 : vector<2x96xf32>
    %cst_26 = arith.constant 1.000000e+00 : f32
    %150 = vector.broadcast %cst_26 : f32 to vector<2x96xf32>
    %151 = arith.addf %150, %149 : vector<2x96xf32>
    %152 = arith.divf %150, %151 : vector<2x96xf32>
    %153 = vector.extract_strided_slice %146 {offsets = [0, 96], sizes = [2, 32], strides = [1, 1]} : vector<2x128xf32> to vector<2x32xf32>
    %154 = math.tanh %153 : vector<2x32xf32>
    %155 = vector.extract_strided_slice %152 {offsets = [0, 0], sizes = [2, 32], strides = [1, 1]} : vector<2x96xf32> to vector<2x32xf32>
    %156 = vector.extract_strided_slice %152 {offsets = [0, 32], sizes = [2, 32], strides = [1, 1]} : vector<2x96xf32> to vector<2x32xf32>
    %157 = vector.extract_strided_slice %152 {offsets = [0, 64], sizes = [2, 32], strides = [1, 1]} : vector<2x96xf32> to vector<2x32xf32>
    %158 = arith.mulf %156, %141 : vector<2x32xf32>
    %159 = arith.mulf %155, %154 : vector<2x32xf32>
    %160 = arith.addf %158, %159 : vector<2x32xf32>
    %161 = math.tanh %160 : vector<2x32xf32>
    %162 = arith.mulf %157, %161 : vector<2x32xf32>
    %163 = tpu.concatenate %29, %48, %67, %86, %105, %124, %143, %162 in 0 : vector<2x32xf32>, vector<2x32xf32>, vector<2x32xf32>, vector<2x32xf32>, vector<2x32xf32>, vector<2x32xf32>, vector<2x32xf32>, vector<2x32xf32> -> vector<16x32xf32>
    %c0_27 = arith.constant 0 : index
    %c0_28 = arith.constant 0 : index
    %c0_29 = arith.constant 0 : index
    %164 = vector.load %arg2[%c0_27, %c0_28, %c0_29] : memref<1x32x128xf32, #tpu.memory_space<vmem>>, vector<1x32x128xf32>
    %165 = vector.shape_cast %164 : vector<1x32x128xf32> to vector<32x128xf32>
    %c1 = arith.constant 1 : index
    %c0_30 = arith.constant 0 : index
    %c0_31 = arith.constant 0 : index
    %166 = vector.load %arg3[%c1, %c0_30, %c0_31] : memref<2x32x128xf32, #tpu.memory_space<vmem>>, vector<1x32x128xf32>
    %167 = vector.shape_cast %166 : vector<1x32x128xf32> to vector<32x128xf32>
    %c1_32 = arith.constant 1 : index
    %c0_33 = arith.constant 0 : index
    %c0_34 = arith.constant 0 : index
    %168 = vector.load %arg4[%c1_32, %c0_33, %c0_34] : memref<2x1x128xf32, #tpu.memory_space<vmem>>, vector<1x1x128xf32>
    %169 = vector.shape_cast %168 : vector<1x1x128xf32> to vector<1x128xf32>
    %cst_35 = arith.constant dense<0.000000e+00> : vector<16x128xf32>
    %170 = tpu.matmul %163, %165, %cst_35 {dimension_numbers = #tpu.dot_dimension_numbers<[1], [0], [0], [1], [0, 0, 1, 1], [], []>} : vector<16x32xf32>, vector<32x128xf32>, vector<16x128xf32> -> vector<16x128xf32>
    %171 = vector.broadcast %169 : vector<1x128xf32> to vector<16x128xf32>
    %172 = arith.addf %170, %171 : vector<16x128xf32>
    %cst_36 = arith.constant 0.000000e+00 : f32
    %173 = vector.broadcast %cst_36 : f32 to vector<2x32xf32>
    %cst_37 = arith.constant 0.000000e+00 : f32
    %174 = vector.broadcast %cst_37 : f32 to vector<2x32xf32>
    %175 = vector.extract_strided_slice %172 {offsets = [0, 0], sizes = [2, 128], strides = [1, 1]} : vector<16x128xf32> to vector<2x128xf32>
    %cst_38 = arith.constant dense<0.000000e+00> : vector<2x128xf32>
    %176 = tpu.matmul %173, %167, %cst_38 {dimension_numbers = #tpu.dot_dimension_numbers<[1], [0], [0], [1], [0, 0, 1, 1], [], []>} : vector<2x32xf32>, vector<32x128xf32>, vector<2x128xf32> -> vector<2x128xf32>
    %177 = arith.addf %175, %176 : vector<2x128xf32>
    %178 = vector.extract_strided_slice %177 {offsets = [0, 0], sizes = [2, 96], strides = [1, 1]} : vector<2x128xf32> to vector<2x96xf32>
    %179 = arith.negf %178 : vector<2x96xf32>
    %180 = math.exp %179 : vector<2x96xf32>
    %cst_39 = arith.constant 1.000000e+00 : f32
    %181 = vector.broadcast %cst_39 : f32 to vector<2x96xf32>
    %182 = arith.addf %181, %180 : vector<2x96xf32>
    %183 = arith.divf %181, %182 : vector<2x96xf32>
    %184 = vector.extract_strided_slice %177 {offsets = [0, 96], sizes = [2, 32], strides = [1, 1]} : vector<2x128xf32> to vector<2x32xf32>
    %185 = math.tanh %184 : vector<2x32xf32>
    %186 = vector.extract_strided_slice %183 {offsets = [0, 0], sizes = [2, 32], strides = [1, 1]} : vector<2x96xf32> to vector<2x32xf32>
    %187 = vector.extract_strided_slice %183 {offsets = [0, 32], sizes = [2, 32], strides = [1, 1]} : vector<2x96xf32> to vector<2x32xf32>
    %188 = vector.extract_strided_slice %183 {offsets = [0, 64], sizes = [2, 32], strides = [1, 1]} : vector<2x96xf32> to vector<2x32xf32>
    %189 = arith.mulf %187, %174 : vector<2x32xf32>
    %190 = arith.mulf %186, %185 : vector<2x32xf32>
    %191 = arith.addf %189, %190 : vector<2x32xf32>
    %192 = math.tanh %191 : vector<2x32xf32>
    %193 = arith.mulf %188, %192 : vector<2x32xf32>
    %194 = vector.extract_strided_slice %172 {offsets = [2, 0], sizes = [2, 128], strides = [1, 1]} : vector<16x128xf32> to vector<2x128xf32>
    %cst_40 = arith.constant dense<0.000000e+00> : vector<2x128xf32>
    %195 = tpu.matmul %193, %167, %cst_40 {dimension_numbers = #tpu.dot_dimension_numbers<[1], [0], [0], [1], [0, 0, 1, 1], [], []>} : vector<2x32xf32>, vector<32x128xf32>, vector<2x128xf32> -> vector<2x128xf32>
    %196 = arith.addf %194, %195 : vector<2x128xf32>
    %197 = vector.extract_strided_slice %196 {offsets = [0, 0], sizes = [2, 96], strides = [1, 1]} : vector<2x128xf32> to vector<2x96xf32>
    %198 = arith.negf %197 : vector<2x96xf32>
    %199 = math.exp %198 : vector<2x96xf32>
    %cst_41 = arith.constant 1.000000e+00 : f32
    %200 = vector.broadcast %cst_41 : f32 to vector<2x96xf32>
    %201 = arith.addf %200, %199 : vector<2x96xf32>
    %202 = arith.divf %200, %201 : vector<2x96xf32>
    %203 = vector.extract_strided_slice %196 {offsets = [0, 96], sizes = [2, 32], strides = [1, 1]} : vector<2x128xf32> to vector<2x32xf32>
    %204 = math.tanh %203 : vector<2x32xf32>
    %205 = vector.extract_strided_slice %202 {offsets = [0, 0], sizes = [2, 32], strides = [1, 1]} : vector<2x96xf32> to vector<2x32xf32>
    %206 = vector.extract_strided_slice %202 {offsets = [0, 32], sizes = [2, 32], strides = [1, 1]} : vector<2x96xf32> to vector<2x32xf32>
    %207 = vector.extract_strided_slice %202 {offsets = [0, 64], sizes = [2, 32], strides = [1, 1]} : vector<2x96xf32> to vector<2x32xf32>
    %208 = arith.mulf %206, %191 : vector<2x32xf32>
    %209 = arith.mulf %205, %204 : vector<2x32xf32>
    %210 = arith.addf %208, %209 : vector<2x32xf32>
    %211 = math.tanh %210 : vector<2x32xf32>
    %212 = arith.mulf %207, %211 : vector<2x32xf32>
    %213 = vector.extract_strided_slice %172 {offsets = [4, 0], sizes = [2, 128], strides = [1, 1]} : vector<16x128xf32> to vector<2x128xf32>
    %cst_42 = arith.constant dense<0.000000e+00> : vector<2x128xf32>
    %214 = tpu.matmul %212, %167, %cst_42 {dimension_numbers = #tpu.dot_dimension_numbers<[1], [0], [0], [1], [0, 0, 1, 1], [], []>} : vector<2x32xf32>, vector<32x128xf32>, vector<2x128xf32> -> vector<2x128xf32>
    %215 = arith.addf %213, %214 : vector<2x128xf32>
    %216 = vector.extract_strided_slice %215 {offsets = [0, 0], sizes = [2, 96], strides = [1, 1]} : vector<2x128xf32> to vector<2x96xf32>
    %217 = arith.negf %216 : vector<2x96xf32>
    %218 = math.exp %217 : vector<2x96xf32>
    %cst_43 = arith.constant 1.000000e+00 : f32
    %219 = vector.broadcast %cst_43 : f32 to vector<2x96xf32>
    %220 = arith.addf %219, %218 : vector<2x96xf32>
    %221 = arith.divf %219, %220 : vector<2x96xf32>
    %222 = vector.extract_strided_slice %215 {offsets = [0, 96], sizes = [2, 32], strides = [1, 1]} : vector<2x128xf32> to vector<2x32xf32>
    %223 = math.tanh %222 : vector<2x32xf32>
    %224 = vector.extract_strided_slice %221 {offsets = [0, 0], sizes = [2, 32], strides = [1, 1]} : vector<2x96xf32> to vector<2x32xf32>
    %225 = vector.extract_strided_slice %221 {offsets = [0, 32], sizes = [2, 32], strides = [1, 1]} : vector<2x96xf32> to vector<2x32xf32>
    %226 = vector.extract_strided_slice %221 {offsets = [0, 64], sizes = [2, 32], strides = [1, 1]} : vector<2x96xf32> to vector<2x32xf32>
    %227 = arith.mulf %225, %210 : vector<2x32xf32>
    %228 = arith.mulf %224, %223 : vector<2x32xf32>
    %229 = arith.addf %227, %228 : vector<2x32xf32>
    %230 = math.tanh %229 : vector<2x32xf32>
    %231 = arith.mulf %226, %230 : vector<2x32xf32>
    %232 = vector.extract_strided_slice %172 {offsets = [6, 0], sizes = [2, 128], strides = [1, 1]} : vector<16x128xf32> to vector<2x128xf32>
    %cst_44 = arith.constant dense<0.000000e+00> : vector<2x128xf32>
    %233 = tpu.matmul %231, %167, %cst_44 {dimension_numbers = #tpu.dot_dimension_numbers<[1], [0], [0], [1], [0, 0, 1, 1], [], []>} : vector<2x32xf32>, vector<32x128xf32>, vector<2x128xf32> -> vector<2x128xf32>
    %234 = arith.addf %232, %233 : vector<2x128xf32>
    %235 = vector.extract_strided_slice %234 {offsets = [0, 0], sizes = [2, 96], strides = [1, 1]} : vector<2x128xf32> to vector<2x96xf32>
    %236 = arith.negf %235 : vector<2x96xf32>
    %237 = math.exp %236 : vector<2x96xf32>
    %cst_45 = arith.constant 1.000000e+00 : f32
    %238 = vector.broadcast %cst_45 : f32 to vector<2x96xf32>
    %239 = arith.addf %238, %237 : vector<2x96xf32>
    %240 = arith.divf %238, %239 : vector<2x96xf32>
    %241 = vector.extract_strided_slice %234 {offsets = [0, 96], sizes = [2, 32], strides = [1, 1]} : vector<2x128xf32> to vector<2x32xf32>
    %242 = math.tanh %241 : vector<2x32xf32>
    %243 = vector.extract_strided_slice %240 {offsets = [0, 0], sizes = [2, 32], strides = [1, 1]} : vector<2x96xf32> to vector<2x32xf32>
    %244 = vector.extract_strided_slice %240 {offsets = [0, 32], sizes = [2, 32], strides = [1, 1]} : vector<2x96xf32> to vector<2x32xf32>
    %245 = vector.extract_strided_slice %240 {offsets = [0, 64], sizes = [2, 32], strides = [1, 1]} : vector<2x96xf32> to vector<2x32xf32>
    %246 = arith.mulf %244, %229 : vector<2x32xf32>
    %247 = arith.mulf %243, %242 : vector<2x32xf32>
    %248 = arith.addf %246, %247 : vector<2x32xf32>
    %249 = math.tanh %248 : vector<2x32xf32>
    %250 = arith.mulf %245, %249 : vector<2x32xf32>
    %251 = vector.extract_strided_slice %172 {offsets = [8, 0], sizes = [2, 128], strides = [1, 1]} : vector<16x128xf32> to vector<2x128xf32>
    %cst_46 = arith.constant dense<0.000000e+00> : vector<2x128xf32>
    %252 = tpu.matmul %250, %167, %cst_46 {dimension_numbers = #tpu.dot_dimension_numbers<[1], [0], [0], [1], [0, 0, 1, 1], [], []>} : vector<2x32xf32>, vector<32x128xf32>, vector<2x128xf32> -> vector<2x128xf32>
    %253 = arith.addf %251, %252 : vector<2x128xf32>
    %254 = vector.extract_strided_slice %253 {offsets = [0, 0], sizes = [2, 96], strides = [1, 1]} : vector<2x128xf32> to vector<2x96xf32>
    %255 = arith.negf %254 : vector<2x96xf32>
    %256 = math.exp %255 : vector<2x96xf32>
    %cst_47 = arith.constant 1.000000e+00 : f32
    %257 = vector.broadcast %cst_47 : f32 to vector<2x96xf32>
    %258 = arith.addf %257, %256 : vector<2x96xf32>
    %259 = arith.divf %257, %258 : vector<2x96xf32>
    %260 = vector.extract_strided_slice %253 {offsets = [0, 96], sizes = [2, 32], strides = [1, 1]} : vector<2x128xf32> to vector<2x32xf32>
    %261 = math.tanh %260 : vector<2x32xf32>
    %262 = vector.extract_strided_slice %259 {offsets = [0, 0], sizes = [2, 32], strides = [1, 1]} : vector<2x96xf32> to vector<2x32xf32>
    %263 = vector.extract_strided_slice %259 {offsets = [0, 32], sizes = [2, 32], strides = [1, 1]} : vector<2x96xf32> to vector<2x32xf32>
    %264 = vector.extract_strided_slice %259 {offsets = [0, 64], sizes = [2, 32], strides = [1, 1]} : vector<2x96xf32> to vector<2x32xf32>
    %265 = arith.mulf %263, %248 : vector<2x32xf32>
    %266 = arith.mulf %262, %261 : vector<2x32xf32>
    %267 = arith.addf %265, %266 : vector<2x32xf32>
    %268 = math.tanh %267 : vector<2x32xf32>
    %269 = arith.mulf %264, %268 : vector<2x32xf32>
    %270 = vector.extract_strided_slice %172 {offsets = [10, 0], sizes = [2, 128], strides = [1, 1]} : vector<16x128xf32> to vector<2x128xf32>
    %cst_48 = arith.constant dense<0.000000e+00> : vector<2x128xf32>
    %271 = tpu.matmul %269, %167, %cst_48 {dimension_numbers = #tpu.dot_dimension_numbers<[1], [0], [0], [1], [0, 0, 1, 1], [], []>} : vector<2x32xf32>, vector<32x128xf32>, vector<2x128xf32> -> vector<2x128xf32>
    %272 = arith.addf %270, %271 : vector<2x128xf32>
    %273 = vector.extract_strided_slice %272 {offsets = [0, 0], sizes = [2, 96], strides = [1, 1]} : vector<2x128xf32> to vector<2x96xf32>
    %274 = arith.negf %273 : vector<2x96xf32>
    %275 = math.exp %274 : vector<2x96xf32>
    %cst_49 = arith.constant 1.000000e+00 : f32
    %276 = vector.broadcast %cst_49 : f32 to vector<2x96xf32>
    %277 = arith.addf %276, %275 : vector<2x96xf32>
    %278 = arith.divf %276, %277 : vector<2x96xf32>
    %279 = vector.extract_strided_slice %272 {offsets = [0, 96], sizes = [2, 32], strides = [1, 1]} : vector<2x128xf32> to vector<2x32xf32>
    %280 = math.tanh %279 : vector<2x32xf32>
    %281 = vector.extract_strided_slice %278 {offsets = [0, 0], sizes = [2, 32], strides = [1, 1]} : vector<2x96xf32> to vector<2x32xf32>
    %282 = vector.extract_strided_slice %278 {offsets = [0, 32], sizes = [2, 32], strides = [1, 1]} : vector<2x96xf32> to vector<2x32xf32>
    %283 = vector.extract_strided_slice %278 {offsets = [0, 64], sizes = [2, 32], strides = [1, 1]} : vector<2x96xf32> to vector<2x32xf32>
    %284 = arith.mulf %282, %267 : vector<2x32xf32>
    %285 = arith.mulf %281, %280 : vector<2x32xf32>
    %286 = arith.addf %284, %285 : vector<2x32xf32>
    %287 = math.tanh %286 : vector<2x32xf32>
    %288 = arith.mulf %283, %287 : vector<2x32xf32>
    %289 = vector.extract_strided_slice %172 {offsets = [12, 0], sizes = [2, 128], strides = [1, 1]} : vector<16x128xf32> to vector<2x128xf32>
    %cst_50 = arith.constant dense<0.000000e+00> : vector<2x128xf32>
    %290 = tpu.matmul %288, %167, %cst_50 {dimension_numbers = #tpu.dot_dimension_numbers<[1], [0], [0], [1], [0, 0, 1, 1], [], []>} : vector<2x32xf32>, vector<32x128xf32>, vector<2x128xf32> -> vector<2x128xf32>
    %291 = arith.addf %289, %290 : vector<2x128xf32>
    %292 = vector.extract_strided_slice %291 {offsets = [0, 0], sizes = [2, 96], strides = [1, 1]} : vector<2x128xf32> to vector<2x96xf32>
    %293 = arith.negf %292 : vector<2x96xf32>
    %294 = math.exp %293 : vector<2x96xf32>
    %cst_51 = arith.constant 1.000000e+00 : f32
    %295 = vector.broadcast %cst_51 : f32 to vector<2x96xf32>
    %296 = arith.addf %295, %294 : vector<2x96xf32>
    %297 = arith.divf %295, %296 : vector<2x96xf32>
    %298 = vector.extract_strided_slice %291 {offsets = [0, 96], sizes = [2, 32], strides = [1, 1]} : vector<2x128xf32> to vector<2x32xf32>
    %299 = math.tanh %298 : vector<2x32xf32>
    %300 = vector.extract_strided_slice %297 {offsets = [0, 0], sizes = [2, 32], strides = [1, 1]} : vector<2x96xf32> to vector<2x32xf32>
    %301 = vector.extract_strided_slice %297 {offsets = [0, 32], sizes = [2, 32], strides = [1, 1]} : vector<2x96xf32> to vector<2x32xf32>
    %302 = vector.extract_strided_slice %297 {offsets = [0, 64], sizes = [2, 32], strides = [1, 1]} : vector<2x96xf32> to vector<2x32xf32>
    %303 = arith.mulf %301, %286 : vector<2x32xf32>
    %304 = arith.mulf %300, %299 : vector<2x32xf32>
    %305 = arith.addf %303, %304 : vector<2x32xf32>
    %306 = math.tanh %305 : vector<2x32xf32>
    %307 = arith.mulf %302, %306 : vector<2x32xf32>
    %308 = vector.extract_strided_slice %172 {offsets = [14, 0], sizes = [2, 128], strides = [1, 1]} : vector<16x128xf32> to vector<2x128xf32>
    %cst_52 = arith.constant dense<0.000000e+00> : vector<2x128xf32>
    %309 = tpu.matmul %307, %167, %cst_52 {dimension_numbers = #tpu.dot_dimension_numbers<[1], [0], [0], [1], [0, 0, 1, 1], [], []>} : vector<2x32xf32>, vector<32x128xf32>, vector<2x128xf32> -> vector<2x128xf32>
    %310 = arith.addf %308, %309 : vector<2x128xf32>
    %311 = vector.extract_strided_slice %310 {offsets = [0, 0], sizes = [2, 96], strides = [1, 1]} : vector<2x128xf32> to vector<2x96xf32>
    %312 = arith.negf %311 : vector<2x96xf32>
    %313 = math.exp %312 : vector<2x96xf32>
    %cst_53 = arith.constant 1.000000e+00 : f32
    %314 = vector.broadcast %cst_53 : f32 to vector<2x96xf32>
    %315 = arith.addf %314, %313 : vector<2x96xf32>
    %316 = arith.divf %314, %315 : vector<2x96xf32>
    %317 = vector.extract_strided_slice %310 {offsets = [0, 96], sizes = [2, 32], strides = [1, 1]} : vector<2x128xf32> to vector<2x32xf32>
    %318 = math.tanh %317 : vector<2x32xf32>
    %319 = vector.extract_strided_slice %316 {offsets = [0, 0], sizes = [2, 32], strides = [1, 1]} : vector<2x96xf32> to vector<2x32xf32>
    %320 = vector.extract_strided_slice %316 {offsets = [0, 32], sizes = [2, 32], strides = [1, 1]} : vector<2x96xf32> to vector<2x32xf32>
    %321 = vector.extract_strided_slice %316 {offsets = [0, 64], sizes = [2, 32], strides = [1, 1]} : vector<2x96xf32> to vector<2x32xf32>
    %322 = arith.mulf %320, %305 : vector<2x32xf32>
    %323 = arith.mulf %319, %318 : vector<2x32xf32>
    %324 = arith.addf %322, %323 : vector<2x32xf32>
    %325 = math.tanh %324 : vector<2x32xf32>
    %326 = arith.mulf %321, %325 : vector<2x32xf32>
    %c0_54 = arith.constant 0 : index
    %c0_55 = arith.constant 0 : index
    %327 = vector.load %arg5[%c0_54, %c0_55] : memref<32x3xf32, #tpu.memory_space<vmem>>, vector<32x3xf32>
    %cst_56 = arith.constant dense<0.000000e+00> : vector<2x3xf32>
    %328 = tpu.matmul %326, %327, %cst_56 {dimension_numbers = #tpu.dot_dimension_numbers<[1], [0], [0], [1], [0, 0, 1, 1], [], []>} : vector<2x32xf32>, vector<32x3xf32>, vector<2x3xf32> -> vector<2x3xf32>
    %c0_57 = arith.constant 0 : index
    %c0_58 = arith.constant 0 : index
    %329 = vector.load %arg6[%c0_57, %c0_58] : memref<1x3xf32, #tpu.memory_space<vmem>>, vector<1x3xf32>
    %330 = vector.broadcast %329 : vector<1x3xf32> to vector<2x3xf32>
    %331 = arith.addf %328, %330 : vector<2x3xf32>
    %c0_59 = arith.constant 0 : index
    %c0_60 = arith.constant 0 : index
    %332 = vector.load %arg7[%c0_59, %c0_60] : memref<2x3xf32, #tpu.memory_space<vmem>>, vector<2x3xf32>
    tpu.vector_store %arg7[%c0_59, %c0_60], %331 {strides = array<i32>} : memref<2x3xf32, #tpu.memory_space<vmem>>, vector<2x3xf32>,
    return
  }
}

</mosaic_0001>

<bundles_post_ra>
// kernel: tpu_custom_call.1
= control target key start
LH: loop header
LB: loop body
LE: loop exit
PB: predicated region body
PF: predicated region fallthrough
CT: control target
= control target key end

     0   :  { %12 = vsyncpa [#allocation3], 0  ;;  %s3090_s0 = inlined_call_operand.vmem [shape: f32[16,4], index: 0, kind: input, shape index: {}]   ;;  %s3091_s1 = inlined_call_operand.hbm [shape: f32[4,128], index: 1, kind: input, shape index: {}]   ;;  %s3092_s2 = inlined_call_operand.hbm [shape: f32[1,32,128], index: 2, kind: input, shape index: {}]   ;;  %s3093_s3 = inlined_call_operand.vmem [shape: f32[2,32,128], index: 3, kind: input, shape index: {}]   ;;  %s3094_s4 = inlined_call_operand.vmem [shape: f32[2,1,128], index: 4, kind: input, shape index: {}]   ;;  %s3095_s5 = inlined_call_operand.vmem [shape: f32[32,3], index: 5, kind: input, shape index: {}]   ;;  %s3096_s6 = inlined_call_operand.vmem [shape: f32[1,3], index: 6, kind: input, shape index: {}]   ;;  %s3097_s7 = inlined_call_operand.hbm [shape: f32[2,3], index: 7, kind: output, shape index: {}]  }
   0x1   :  { %13 = vsyncpa [#allocation6], 0 }
   0x2   :  { %14 = vsyncpa [#allocation4], 0  ;;  %s2711_s24 = smov [#allocation2]   ;;  %s2712_s26 = smov [#allocation5]  }
   0x3   :  { %s23_s25 = sshll.u32 %s2711_s24, 4  ;;  %s32_s27 = sshll.u32 %s2712_s26, 4  ;;  %s24_s25 = int_to_ptr.vmem [resolvable:$true] %s23_s25  ;;  %s2761_s27 = int_to_ptr.vmem [resolvable:$true] %s32_s27 }
   0x4   :  { %s2639_s30 = scalar_lea.hbm %s3091_s1, 64 }
   0x5   :  { %p2640_p0 = scmp.ne.s32.totalorder %s3091_s1, %s2639_s30  ;;  %p2643_p1 = scmp.lt.u32.totalorder %s2639_s30, %s3091_s1 }
   0x7   :  { %p2645_p2 = pnand %p2643_p1, %p2640_p0 }
   0x9   :  { %2648 = shalt.err (!%p2645_p2)
}
   0xa   :  { %s2649_s12 = scalar_lea.vmem %s24_s25, 64  ;;  %p2654_p4 = scmp.lt.s32.totalorder %s24_s25, %s24_s25 }
   0xb   :  { %p2650_p3 = scmp.ne.s32.totalorder %s24_s25, %s2649_s12  ;;  %p2655_p5 = scmp.lt.s32.totalorder %s2649_s12, %s2649_s12 }
   0xd   :  { %p2656_p6 = por %p2655_p5, %p2654_p4 }
   0xf   :  { %p2657_p7 = pnand %p2656_p6, %p2650_p3 }
  0x11   :  { %2660 = shalt.err (!%p2657_p7)
}
  0x12   :  { %26 = dma.hbm_to_vmem [thread:$0]  %s3091_s1, 64, %s24_s25, [#allocation3]  }
  0x13   :  { %s2661_s17 = scalar_lea.hbm %s3092_s2, 512 }
  0x14   :  { %p2662_p8 = scmp.ne.s32.totalorder %s3092_s2, %s2661_s17  ;;  %p2665_p9 = scmp.lt.u32.totalorder %s2661_s17, %s3092_s2 }
  0x16   :  { %p2667_p10 = pnand %p2665_p9, %p2662_p8 }
  0x18   :  { %2670 = shalt.err (!%p2667_p10)
}
  0x19   :  { %s2671_s22 = scalar_lea.vmem %s2761_s27, 512  ;;  %p2676_p12 = scmp.lt.s32.totalorder %s2761_s27, %s2761_s27 }
  0x1a   :  { %p2672_p11 = scmp.ne.s32.totalorder %s2761_s27, %s2671_s22  ;;  %p2677_p13 = scmp.lt.s32.totalorder %s2671_s22, %s2671_s22 }
  0x1c   :  { %p2678_p0 = por %p2677_p13, %p2676_p12 }
  0x1e   :  { %p2679_p1 = pnand %p2678_p0, %p2672_p11 }
  0x20   :  { %2682 = shalt.err (!%p2679_p1)
}
  0x21   :  { %s2713_s1 = smov 128   ;;  %s2714_s23 = smov 8  }
  0x22   :  { %38 = dma.hbm_to_vmem [thread:$0]  %s3092_s2, 512, %s2761_s27, [#allocation6], %s2713_s1, %s2713_s1, %s2714_s23  }
  0x23   :  { %2705 = dma.done.wait [#allocation3], 64  }
  0x24   :  { %2706 = vsyncadd [#allocation3], 4294967232 }
  0x25   :  { %2707 = dma.done.wait [#allocation6], 512  }
  0x26   :  { %2708 = vsyncadd [#allocation6], 4294966784  ;;  %v2715_v0 = vmov 0.0|0.0   ;;  %vm2716_vm0 = vmmov 0   ;;  %v2717_v1 = vmov 0.0   ;;  %vm74_vm1 = vcmask 1043456  }
  0x27   :  { %2391 = vmatprep.subr.bf16.mxu1 %v2715_v0  ;;  %2201 = vmatprep.mubr.msk.f32.mxu1 %vm2716_vm0, %v2717_v1  ;;  %vm67_vm2 = vcmask 31744   ;;  %v56_v2 = vld [vmem:[%s3093_s3] sm:$0xff]  ;;  %v57_v3 = vld [vmem:[%s3093_s3 + $0x8] sm:$0xff]  ;;  %v55_v4 = vld [vmem:[#allocation2] sm:$0xf]  ;;  %s2718_s15 = smov 32  }
  0x28   :  { %v2801_v5 = vpack.c.bf16 %v57_v3, %v56_v2  ;;  %2188 = vmatprep.subr.msk.mxu0 %vm74_vm1, %v55_v4  ;;  %v53_v6 = vld [vmem:[%s3090_s0] sm:$0xff]  ;;  %v54_v7 = vld [vmem:[%s3090_s0 + $0x8] sm:$0xff]  ;;  %v58_v8 = vld [vmem:[%s3093_s3 + $0x10] sm:$0xff]  ;;  %s2719_s16 = smov 64   ;;  %vm153_vm3 = vcmask 261120   ;;  %vm996_vm4 = vcmask 1041408  }
  0x29   :  { %2189 = vmatpush3.msk.msra.mxu0 %vm74_vm1, %v55_v4  ;;  %2190 = vmatprep.mubr.msk.f32.mxu0 %vm67_vm2, %v53_v6  ;;  %v59_v9 = vld [vmem:[%s3093_s3 + $0x18] sm:$0xff]  ;;  %v2050_v11 = vld [vmem:[%s3094_s4] ss:$0 sm:$0xff]  ;;  %vm999_vm5 = vcmask 1045504   ;;  %vm2032_vm6 = vcmask 17408  }
  0x2a   :  { %2393 = vmatpush3.bf16.msra.mxu1 %v2801_v5  ;;  %2191 = vmatmul.mubr.msk.f32.vlgmr.msra.gmra.mrb[0].mxu0 %vm67_vm2, %v54_v7  ;;  %v2818_v10 = vpack.c.bf16 %v59_v9, %v58_v8 }
  0x2b   :  { %2394 = vmatprep.subr.bf16.mxu1 %v2715_v0  ;;  %2397 = vmatprep.subr.bf16.mxu0 %v2715_v0 }
  0x2c   :  { %2399 = vmatpush3.bf16.msra.mxu0 %v2801_v5  ;;  %2212 = vmatprep.mubr.msk.f32.mxu0 %vm2716_vm0, %v2717_v1 }
  0x2d   :  { %2400 = vmatprep.subr.bf16.mxu0 %v2715_v0 }
  0x2e   :  { %2396 = vmatpush3.bf16.msra.mxu1 %v2818_v10 }
  0x2f   :  { %2403 = vmatprep.subr.bf16.mxu1 %v2715_v0 }
  0x30   :  { %2402 = vmatpush3.bf16.msra.mxu0 %v2818_v10 }
  0x31   :  { %2202 = vmatmul.mubr.f32.vlgmr.msra.gmra.mrb[0].mxu1 %v2717_v1  ;;  %2409 = vmatprep.subr.bf16.mxu0 %v2715_v0 }
  0x32   :  { %2405 = vmatpush3.bf16.msra.mxu1 %v2801_v5  ;;  %2223 = vmatprep.mubr.msk.f32.mxu1 %vm2716_vm0, %v2717_v1 }
  0x33   :  { %2406 = vmatprep.subr.bf16.mxu1 %v2715_v0 }
  0x36   :  { %2408 = vmatpush3.bf16.msra.mxu1 %v2818_v10 }
  0x37   :  { %2415 = vmatprep.subr.bf16.mxu1 %v2715_v0 }
  0xfd   :  { %v2192_v12 = vpop.f32.mrb[0].mxu0 }
  0xfe   :  { %v2840_v13 = vadd.f32 %v2192_v12, %v2050_v11  ;;  %v144_v14 = vpop.f32.mrb[1].mxu0 }
  0xff   :  { %v2842_v15 = vadd.f32 %v2050_v11, %v144_v14 }
 0x104   :  { %v223_v16 = vpop.f32.mrb[0].mxu1 }
 0x105   :  { %v227_v17 = vadd.f32 %v223_v16, %v2842_v15  ;;  %v2203_v18 = vpop.f32.mrb[1].mxu1 }
 0x107   :  { %2511 = vtanh.f32 %v227_v17  ;;  %v2054_v20 = vmul.f32 -1.442695, %v227_v17 }
 0x109   :  { %2513 = vpow2.f32 %v2054_v20 }
 0x111   :  { %v2512_v19 = vpop.eup %2511 }
 0x112   :  { %237 = vrot.lane.b32.xlu0 %v2512_v19, %s2718_s15 }
 0x113   :  { %v2514_v21 = vpop.eup %2513 }
 0x114   :  { %v231_v22 = vadd.f32 1.0, %v2514_v21 }
 0x116   :  { %2515 = vrcp.f32 %v231_v22 }
 0x120   :  { %v2516_v23 = vpop.eup %2515 }
 0x121   :  { %v235_v26 = vmul.f32 0.0, %v2516_v23 }
 0x184   :  { %v238_v24 = vpop.permute.xlu0 %237 }
 0x185   :  { %v240_v25 = vmul.f32 %v2516_v23, %v238_v24 }
 0x187   :  { %242 = vrot.lane.b32.xlu0 %v240_v25, %s2718_s15 }
 0x1f9   :  { %v243_v27 = vpop.permute.xlu0 %242 }
 0x1fa   :  { %v245_v28 = vadd.f32 %v243_v27, %v235_v26 }
 0x1fc   :  { %2517 = vtanh.f32 %v245_v28  ;;  %v339_v44 = vrot.slane %v245_v28, 6 }
 0x206   :  { %v2518_v29 = vpop.eup %2517 }
 0x207   :  { %248 = vrot.lane.b32.xlu1 %v2518_v29, %s2718_s15 }
 0x279   :  { %v249_v30 = vpop.permute.xlu1 %248 }
 0x27a   :  { %v2848_v31 = vmul.f32 %v2516_v23, %v249_v30 }
 0x27c   :  { %253 = vrot.lane.b32.xlu1 %v2848_v31, %s2719_s16 }
 0x2ee   :  { %v254_v32 = vpop.permute.xlu1 %253 }
 0x2ef   :  { %2213 = vmatmul.mubr.msk.f32.vlgmr.msra.gmra.mrb[2].mxu0 %vm153_vm3, %v254_v32 }
 0x2f0   :  { %2411 = vmatpush3.bf16.msra.mxu0 %v2801_v5  ;;  %2234 = vmatprep.mubr.msk.f32.mxu0 %vm2716_vm0, %v2717_v1 }
 0x2f1   :  { %2412 = vmatprep.subr.bf16.mxu0 %v2715_v0 }
 0x2f4   :  { %2414 = vmatpush3.bf16.msra.mxu0 %v2818_v10 }
 0x2f5   :  { %2421 = vmatprep.subr.bf16.mxu0 %v2715_v0 }
 0x3c2   :  { %v323_v33 = vpop.f32.mrb[2].mxu0 }
 0x3c3   :  { %v328_v34 = vrot.slane %v323_v33, 6  ;;  %v2214_v35 = vpop.f32.mrb[3].mxu0 }
 0x3c5   :  { %v330_v36 = vadd.f32 %v328_v34, %v2842_v15 }
 0x3c7   :  { %2519 = vtanh.f32 %v330_v36  ;;  %v2056_v38 = vmul.f32 -1.442695, %v330_v36 }
 0x3c9   :  { %2521 = vpow2.f32 %v2056_v38 }
 0x3d1   :  { %v2520_v37 = vpop.eup %2519 }
 0x3d2   :  { %343 = vrot.lane.b32.xlu0 %v2520_v37, %s2718_s15 }
 0x3d3   :  { %v2522_v39 = vpop.eup %2521 }
 0x3d4   :  { %v334_v40 = vadd.f32 1.0, %v2522_v39 }
 0x3d6   :  { %2523 = vrcp.f32 %v334_v40 }
 0x3e0   :  { %v2524_v41 = vpop.eup %2523 }
 0x3e1   :  { %v341_v45 = vmul.f32 %v2524_v41, %v339_v44 }
 0x444   :  { %v344_v42 = vpop.permute.xlu0 %343 }
 0x445   :  { %v346_v43 = vmul.f32 %v2524_v41, %v344_v42 }
 0x447   :  { %348 = vrot.lane.b32.xlu1 %v346_v43, %s2718_s15 }
 0x4b9   :  { %v349_v46 = vpop.permute.xlu1 %348 }
 0x4ba   :  { %v351_v47 = vadd.f32 %v349_v46, %v341_v45 }
 0x4bc   :  { %2525 = vtanh.f32 %v351_v47  ;;  %v446_v2 = vrot.slane %v351_v47, 6 }
 0x4c6   :  { %v2526_v48 = vpop.eup %2525 }
 0x4c7   :  { %354 = vrot.lane.b32.xlu0 %v2526_v48, %s2718_s15 }
 0x539   :  { %v355_v49 = vpop.permute.xlu0 %354 }
 0x53a   :  { %v357_v50 = vmul.f32 %v2524_v41, %v355_v49 }
 0x53c   :  { %v359_v51 = vrot.slane %v357_v50, 2  ;;  %v997_v11 = vsel %vm996_vm4, %v2848_v31, %v357_v50 }
 0x53e   :  { %360 = vrot.lane.b32.xlu1 %v359_v51, %s2719_s16 }
 0x5b0   :  { %v361_v52 = vpop.permute.xlu1 %360 }
 0x5b1   :  { %2224 = vmatmul.mubr.msk.f32.vlgmr.msra.gmra.mrb[2].mxu1 %vm153_vm3, %v361_v52 }
 0x5b2   :  { %2417 = vmatpush3.bf16.msra.mxu1 %v2801_v5  ;;  %2245 = vmatprep.mubr.msk.f32.mxu1 %vm2716_vm0, %v2717_v1 }
 0x5b3   :  { %2418 = vmatprep.subr.bf16.mxu1 %v2715_v0 }
 0x5b6   :  { %2420 = vmatpush3.bf16.msra.mxu1 %v2818_v10 }
 0x5b7   :  { %2427 = vmatprep.subr.bf16.mxu1 %v2715_v0 }
 0x684   :  { %v430_v53 = vpop.f32.mrb[2].mxu1 }
 0x685   :  { %v435_v54 = vrot.slane %v430_v53, 4  ;;  %v2225_v55 = vpop.f32.mrb[3].mxu1 }
 0x687   :  { %v437_v56 = vadd.f32 %v435_v54, %v2842_v15 }
 0x689   :  { %2527 = vtanh.f32 %v437_v56  ;;  %v2058_v58 = vmul.f32 -1.442695, %v437_v56 }
 0x68b   :  { %2529 = vpow2.f32 %v2058_v58 }
 0x693   :  { %v2528_v57 = vpop.eup %2527 }
 0x694   :  { %450 = vrot.lane.b32.xlu0 %v2528_v57, %s2718_s15 }
 0x695   :  { %v2530_v59 = vpop.eup %2529 }
 0x696   :  { %v441_v60 = vadd.f32 1.0, %v2530_v59 }
 0x698   :  { %2531 = vrcp.f32 %v441_v60 }
 0x6a2   :  { %v2532_v61 = vpop.eup %2531 }
 0x6a3   :  { %v448_v3 = vmul.f32 %v2532_v61, %v446_v2 }
 0x706   :  { %v451_v62 = vpop.permute.xlu0 %450 }
 0x707   :  { %v453_v63 = vmul.f32 %v2532_v61, %v451_v62 }
 0x709   :  { %455 = vrot.lane.b32.xlu1 %v453_v63, %s2718_s15 }
 0x77b   :  { %v456_v4 = vpop.permute.xlu1 %455 }
 0x77c   :  { %v458_v6 = vadd.f32 %v456_v4, %v448_v3 }
 0x77e   :  { %2533 = vtanh.f32 %v458_v6  ;;  %v553_v28 = vrot.slane %v458_v6, 6 }
 0x788   :  { %v2534_v7 = vpop.eup %2533 }
 0x789   :  { %461 = vrot.lane.b32.xlu0 %v2534_v7, %s2718_s15 }
 0x7fb   :  { %v462_v8 = vpop.permute.xlu0 %461 }
 0x7fc   :  { %v464_v9 = vmul.f32 %v2532_v61, %v462_v8 }
 0x7fe   :  { %v466_v12 = vrot.slane %v464_v9, 4  ;;  %v998_v14 = vsel %vm74_vm1, %v997_v11, %v464_v9 }
 0x800   :  { %467 = vrot.lane.b32.xlu1 %v466_v12, %s2719_s16 }
 0x872   :  { %v468_v16 = vpop.permute.xlu1 %467 }
 0x873   :  { %2235 = vmatmul.mubr.msk.f32.vlgmr.msra.gmra.mrb[4].mxu0 %vm153_vm3, %v468_v16 }
 0x874   :  { %2423 = vmatpush3.bf16.msra.mxu0 %v2801_v5  ;;  %2256 = vmatprep.mubr.msk.f32.mxu0 %vm2716_vm0, %v2717_v1 }
 0x875   :  { %2424 = vmatprep.subr.bf16.mxu0 %v2715_v0 }
 0x878   :  { %2426 = vmatpush3.bf16.msra.mxu0 %v2818_v10 }
 0x879   :  { %2433 = vmatprep.subr.bf16.mxu0 %v2715_v0 }
 0x946   :  { %v537_v17 = vpop.f32.mrb[4].mxu0 }
 0x947   :  { %v542_v18 = vrot.slane %v537_v17, 2  ;;  %v2236_v19 = vpop.f32.mrb[5].mxu0 }
 0x949   :  { %v544_v20 = vadd.f32 %v542_v18, %v2842_v15 }
 0x94b   :  { %2535 = vtanh.f32 %v544_v20  ;;  %v2060_v22 = vmul.f32 -1.442695, %v544_v20 }
 0x94d   :  { %2537 = vpow2.f32 %v2060_v22 }
 0x955   :  { %v2536_v21 = vpop.eup %2535 }
 0x956   :  { %557 = vrot.lane.b32.xlu0 %v2536_v21, %s2718_s15 }
 0x957   :  { %v2538_v23 = vpop.eup %2537 }
 0x958   :  { %v548_v24 = vadd.f32 1.0, %v2538_v23 }
 0x95a   :  { %2539 = vrcp.f32 %v548_v24 }
 0x964   :  { %v2540_v25 = vpop.eup %2539 }
 0x965   :  { %v555_v29 = vmul.f32 %v2540_v25, %v553_v28 }
 0x9c8   :  { %v558_v26 = vpop.permute.xlu0 %557 }
 0x9c9   :  { %v560_v27 = vmul.f32 %v2540_v25, %v558_v26 }
 0x9cb   :  { %562 = vrot.lane.b32.xlu1 %v560_v27, %s2718_s15 }
 0xa3d   :  { %v563_v30 = vpop.permute.xlu1 %562 }
 0xa3e   :  { %v565_v31 = vadd.f32 %v563_v30, %v555_v29 }
 0xa40   :  { %2541 = vtanh.f32 %v565_v31  ;;  %v657_v47 = vrot.slane %v565_v31, 6 }
 0xa4a   :  { %v2542_v15 = vpop.eup %2541 }
 0xa4b   :  { %568 = vrot.lane.b32.xlu0 %v2542_v15, %s2718_s15 }
 0xabd   :  { %v569_v32 = vpop.permute.xlu0 %568 }
 0xabe   :  { %v571_v33 = vmul.f32 %v2540_v25, %v569_v32 }
 0xac0   :  { %v573_v34 = vrot.slane %v571_v33, 6  ;;  %v2891_v35 = vsel %vm999_vm5, %v998_v14, %v571_v33 }
 0xac2   :  { %574 = vrot.lane.b32.xlu1 %v573_v34, %s2719_s16 }
 0xb34   :  { %v575_v36 = vpop.permute.xlu1 %574 }
 0xb35   :  { %2246 = vmatmul.mubr.msk.f32.vlgmr.msra.gmra.mrb[4].mxu1 %vm153_vm3, %v575_v36 }
 0xb36   :  { %2429 = vmatpush3.bf16.msra.mxu1 %v2801_v5  ;;  %2267 = vmatprep.mubr.msk.f32.mxu1 %vm2716_vm0, %v2717_v1 }
 0xb37   :  { %2430 = vmatprep.subr.bf16.mxu1 %v2715_v0 }
 0xb3a   :  { %2432 = vmatpush3.bf16.msra.mxu1 %v2818_v10 }
 0xc08   :  { %v644_v37 = vpop.f32.mrb[4].mxu1 }
 0xc09   :  { %v648_v38 = vadd.f32 %v644_v37, %v2840_v13  ;;  %v2247_v39 = vpop.f32.mrb[5].mxu1 }
 0xc0b   :  { %2543 = vtanh.f32 %v648_v38  ;;  %v2062_v41 = vmul.f32 -1.442695, %v648_v38 }
 0xc0d   :  { %2545 = vpow2.f32 %v2062_v41 }
 0xc15   :  { %v2544_v40 = vpop.eup %2543 }
 0xc16   :  { %661 = vrot.lane.b32.xlu0 %v2544_v40, %s2718_s15 }
 0xc17   :  { %v2546_v42 = vpop.eup %2545 }
 0xc18   :  { %v652_v43 = vadd.f32 1.0, %v2546_v42 }
 0xc1a   :  { %2547 = vrcp.f32 %v652_v43 }
 0xc24   :  { %v2548_v44 = vpop.eup %2547 }
 0xc25   :  { %v659_v48 = vmul.f32 %v2548_v44, %v657_v47 }
 0xc88   :  { %v662_v45 = vpop.permute.xlu0 %661 }
 0xc89   :  { %v664_v46 = vmul.f32 %v2548_v44, %v662_v45 }
 0xc8b   :  { %666 = vrot.lane.b32.xlu1 %v664_v46, %s2718_s15 }
 0xcfd   :  { %v667_v49 = vpop.permute.xlu1 %666 }
 0xcfe   :  { %v669_v50 = vadd.f32 %v667_v49, %v659_v48 }
 0xd00   :  { %2549 = vtanh.f32 %v669_v50 }
 0xd0a   :  { %v2550_v51 = vpop.eup %2549 }
 0xd0b   :  { %672 = vrot.lane.b32.xlu0 %v2550_v51, %s2718_s15 }
 0xd7d   :  { %v673_v52 = vpop.permute.xlu0 %672 }
 0xd7e   :  { %v2904_v53 = vmul.f32 %v2548_v44, %v673_v52  ;;  %v1004_v52 = vld [vmem:[#allocation5] sm:$0xff] }
 0xd80   :  { %677 = vrot.lane.b32.xlu1 %v2904_v53, %s2719_s16 }
 0xdf2   :  { %v678_v54 = vpop.permute.xlu1 %677 }
 0xdf3   :  { %2257 = vmatmul.mubr.msk.f32.vlgmr.msra.gmra.mrb[6].mxu0 %vm153_vm3, %v678_v54  ;;  %v2069_v54 = vld [vmem:[%s3093_s3 + $0x20] sm:$0xff] }
 0xdf4   :  { %2435 = vmatpush3.bf16.msra.mxu0 %v2801_v5  ;;  %2278 = vmatprep.mubr.msk.f32.mxu0 %vm2716_vm0, %v2717_v1 }
 0xdf5   :  { %2436 = vmatprep.subr.bf16.mxu0 %v2715_v0 }
 0xdf8   :  { %2438 = vmatpush3.bf16.msra.mxu0 %v2818_v10  ;;  %v763_v10 = vrot.slane %v669_v50, 6 }
 0xdf9   :  { %2447 = vmatprep.subr.bf16.mxu0 %v2715_v0 }
 0xec6   :  { %v747_v55 = vpop.f32.mrb[6].mxu0 }
 0xec7   :  { %v752_v56 = vrot.slane %v747_v55, 6  ;;  %v2258_v57 = vpop.f32.mrb[7].mxu0 }
 0xec8   :  { %v1007_v57 = vld [vmem:[#allocation5 + $0x18] sm:$0xff] }
 0xec9   :  { %v754_v58 = vadd.f32 %v752_v56, %v2840_v13  ;;  %v2070_v56 = vld [vmem:[%s3093_s3 + $0x28] sm:$0xff] }
 0xecb   :  { %2551 = vtanh.f32 %v754_v58  ;;  %v2064_v60 = vmul.f32 -1.442695, %v754_v58  ;;  %v2944_v58 = vpack.c.bf16 %v2070_v56, %v2069_v54 }
 0xecd   :  { %2553 = vpow2.f32 %v2064_v60  ;;  %v2071_v60 = vld [vmem:[%s3093_s3 + $0x30] sm:$0xff] }
 0xed5   :  { %v2552_v59 = vpop.eup %2551 }
 0xed6   :  { %767 = vrot.lane.b32.xlu0 %v2552_v59, %s2718_s15 }
 0xed7   :  { %v2554_v5 = vpop.eup %2553 }
 0xed8   :  { %v758_v61 = vadd.f32 1.0, %v2554_v5  ;;  %v2072_v5 = vld [vmem:[%s3093_s3 + $0x38] sm:$0xff] }
 0xeda   :  { %2555 = vrcp.f32 %v758_v61  ;;  %v2953_v61 = vpack.c.bf16 %v2072_v5, %v2071_v60 }
 0xee4   :  { %v2556_v62 = vpop.eup %2555 }
 0xee5   :  { %v765_v3 = vmul.f32 %v2556_v62, %v763_v10 }
 0xf48   :  { %v768_v63 = vpop.permute.xlu0 %767 }
 0xf49   :  { %v770_v2 = vmul.f32 %v2556_v62, %v768_v63 }
 0xf4b   :  { %772 = vrot.lane.b32.xlu1 %v770_v2, %s2718_s15 }
 0xfbd   :  { %v773_v4 = vpop.permute.xlu1 %772 }
 0xfbe   :  { %v775_v6 = vadd.f32 %v773_v4, %v765_v3 }
 0xfc0   :  { %2557 = vtanh.f32 %v775_v6  ;;  %v870_v26 = vrot.slane %v775_v6, 6 }
 0xfca   :  { %v2558_v7 = vpop.eup %2557 }
 0xfcb   :  { %778 = vrot.lane.b32.xlu0 %v2558_v7, %s2718_s15  ;;  %v2074_v7 = vld [vmem:[%s3094_s4 + $0x1] ss:$0 sm:$0xff] }
0x103d   :  { %v779_v8 = vpop.permute.xlu0 %778 }
0x103e   :  { %v781_v9 = vmul.f32 %v2556_v62, %v779_v8 }
0x1040   :  { %v783_v11 = vrot.slane %v781_v9, 2  ;;  %v1001_v32 = vsel %vm996_vm4, %v2904_v53, %v781_v9  ;;  %v1005_v53 = vld [vmem:[#allocation5 + $0x8] sm:$0xff] }
0x1041   :  { %v2439_v55 = vpack.c.bf16 %v1005_v53, %v1004_v52 }
0x1042   :  { %784 = vrot.lane.b32.xlu1 %v783_v11, %s2719_s16 }
0x1043   :  { %2440 = vmatprep.subr.bf16.mxu1 %v2439_v55 }
0x10b4   :  { %v785_v12 = vpop.permute.xlu1 %784 }
0x10b5   :  { %2268 = vmatmul.mubr.msk.f32.vlgmr.msra.gmra.mrb[6].mxu1 %vm153_vm3, %v785_v12 }
0x10b6   :  { %2442 = vmatpush3.bf16.msra.mxu1 %v2439_v55 }
0x1188   :  { %v854_v14 = vpop.f32.mrb[6].mxu1 }
0x1189   :  { %v859_v16 = vrot.slane %v854_v14, 4  ;;  %v2269_v17 = vpop.f32.mrb[7].mxu1 }
0x118b   :  { %v861_v18 = vadd.f32 %v859_v16, %v2840_v13 }
0x118d   :  { %2559 = vtanh.f32 %v861_v18  ;;  %v2066_v20 = vmul.f32 -1.442695, %v861_v18 }
0x118f   :  { %2561 = vpow2.f32 %v2066_v20 }
0x1197   :  { %v2560_v19 = vpop.eup %2559 }
0x1198   :  { %874 = vrot.lane.b32.xlu0 %v2560_v19, %s2718_s15 }
0x1199   :  { %v2562_v21 = vpop.eup %2561 }
0x119a   :  { %v865_v22 = vadd.f32 1.0, %v2562_v21 }
0x119c   :  { %2563 = vrcp.f32 %v865_v22 }
0x11a6   :  { %v2564_v23 = vpop.eup %2563 }
0x11a7   :  { %v872_v27 = vmul.f32 %v2564_v23, %v870_v26 }
0x120a   :  { %v875_v24 = vpop.permute.xlu0 %874 }
0x120b   :  { %v877_v25 = vmul.f32 %v2564_v23, %v875_v24 }
0x120d   :  { %879 = vrot.lane.b32.xlu1 %v877_v25, %s2718_s15 }
0x127f   :  { %v880_v28 = vpop.permute.xlu1 %879 }
0x1280   :  { %v882_v29 = vadd.f32 %v880_v28, %v872_v27 }
0x1282   :  { %2565 = vtanh.f32 %v882_v29  ;;  %v977_v48 = vrot.slane %v882_v29, 6 }
0x128c   :  { %v2566_v30 = vpop.eup %2565 }
0x128d   :  { %885 = vrot.lane.b32.xlu0 %v2566_v30, %s2718_s15 }
0x12ff   :  { %v886_v31 = vpop.permute.xlu0 %885 }
0x1300   :  { %v888_v15 = vmul.f32 %v2564_v23, %v886_v31 }
0x1302   :  { %v890_v33 = vrot.slane %v888_v15, 4  ;;  %v1002_v34 = vsel %vm74_vm1, %v1001_v32, %v888_v15 }
0x1304   :  { %891 = vrot.lane.b32.xlu1 %v890_v33, %s2719_s16 }
0x1376   :  { %v892_v36 = vpop.permute.xlu1 %891 }
0x1377   :  { %2279 = vmatmul.mubr.msk.f32.vlgmr.msra.gmra.mrb[8].mxu0 %vm153_vm3, %v892_v36 }
0x1378   :  { %2300 = vmatprep.mubr.msk.f32.mxu0 %vm2716_vm0, %v2717_v1  ;;  %2449 = vmatpush3.bf16.msra.mxu0 %v2944_v58 }
0x1379   :  { %2450 = vmatprep.subr.bf16.mxu0 %v2715_v0 }
0x137c   :  { %2452 = vmatpush3.bf16.msra.mxu0 %v2953_v61 }
0x137d   :  { %2459 = vmatprep.subr.bf16.mxu0 %v2715_v0 }
0x137f   :  { %2301 = vmatmul.mubr.f32.vlgmr.msra.gmra.mrb[10].mxu0 %v2717_v1 }
0x1380   :  { %2461 = vmatpush3.bf16.msra.mxu0 %v2944_v58  ;;  %2322 = vmatprep.mubr.msk.f32.mxu0 %vm2716_vm0, %v2717_v1 }
0x1381   :  { %2462 = vmatprep.subr.bf16.mxu0 %v2715_v0 }
0x1384   :  { %2464 = vmatpush3.bf16.msra.mxu0 %v2953_v61 }
0x1385   :  { %2471 = vmatprep.subr.bf16.mxu0 %v2715_v0 }
0x144a   :  { %v961_v37 = vpop.f32.mrb[8].mxu0 }
0x144b   :  { %v966_v38 = vrot.slane %v961_v37, 2  ;;  %v2280_v39 = vpop.f32.mrb[9].mxu0 }
0x144d   :  { %v968_v40 = vadd.f32 %v966_v38, %v2840_v13 }
0x144f   :  { %2567 = vtanh.f32 %v968_v40  ;;  %v2068_v42 = vmul.f32 -1.442695, %v968_v40 }
0x1451   :  { %2569 = vpow2.f32 %v2068_v42 }
0x1452   :  { %v1172_v4 = vpop.f32.mrb[10].mxu0 }
0x1453   :  { %v2302_v6 = vpop.f32.mrb[11].mxu0 }
0x1459   :  { %v2568_v41 = vpop.eup %2567 }
0x145a   :  { %981 = vrot.lane.b32.xlu0 %v2568_v41, %s2718_s15 }
0x145b   :  { %v2570_v43 = vpop.eup %2569 }
0x145c   :  { %v972_v44 = vadd.f32 1.0, %v2570_v43 }
0x145e   :  { %2571 = vrcp.f32 %v972_v44 }
0x1468   :  { %v2572_v45 = vpop.eup %2571 }
0x1469   :  { %v979_v49 = vmul.f32 %v2572_v45, %v977_v48 }
0x14cc   :  { %v982_v46 = vpop.permute.xlu0 %981 }
0x14cd   :  { %v984_v47 = vmul.f32 %v2572_v45, %v982_v46 }
0x14cf   :  { %986 = vrot.lane.b32.xlu1 %v984_v47, %s2718_s15 }
0x14d3   :  { %1023 = vrot.lane.b32.xlu1 %v2891_v35, %s2719_s16  ;;  %v1006_v35 = vld [vmem:[#allocation5 + $0x10] sm:$0xff] }
0x14d4   :  { %v2443_v59 = vpack.c.bf16 %v1007_v57, %v1006_v35 }
0x14d6   :  { %2444 = vmatprep.subr.bf16.mxu1 %v2443_v59 }
0x14d7   :  { %2446 = vmatpush3.bf16.msra.mxu1 %v2443_v59 }
0x14d8   :  { %2453 = vmatprep.subr.bf16.mxu1 %v2715_v0 }
0x1541   :  { %v987_v13 = vpop.permute.xlu1 %986 }
0x1542   :  { %v989_v50 = vadd.f32 %v987_v13, %v979_v49 }
0x1544   :  { %2573 = vtanh.f32 %v989_v50 }
0x1545   :  { %v1024_v51 = vpop.permute.xlu1 %1023 }
0x1546   :  { %2289 = vmatprep.mubr.msk.f32.mxu1 %vm153_vm3, %v1024_v51 }
0x154e   :  { %v2574_v62 = vpop.eup %2573 }
0x154f   :  { %992 = vrot.lane.b32.xlu0 %v2574_v62, %s2718_s15 }
0x15c1   :  { %v993_v63 = vpop.permute.xlu0 %992 }
0x15c2   :  { %v995_v2 = vmul.f32 %v2572_v45, %v993_v63 }
0x15c4   :  { %v1003_v10 = vsel %vm999_vm5, %v1002_v34, %v995_v2 }
0x15c5   :  { %1025 = vrot.lane.b32.xlu0 %v1003_v10, %s2719_s16 }
0x1637   :  { %v1026_v3 = vpop.permute.xlu0 %1025 }
0x1638   :  { %2290 = vmatmul.mubr.msk.f32.vlgmr.msra.gmra.mrb[8].mxu1 %vm153_vm3, %v1026_v3 }
0x1639   :  { %2455 = vmatpush3.bf16.msra.mxu1 %v2944_v58  ;;  %2311 = vmatprep.mubr.msk.f32.mxu1 %vm2716_vm0, %v2717_v1 }
0x163a   :  { %2456 = vmatprep.subr.bf16.mxu1 %v2715_v0 }
0x163d   :  { %2458 = vmatpush3.bf16.msra.mxu1 %v2953_v61 }
0x163e   :  { %2465 = vmatprep.subr.bf16.mxu1 %v2715_v0 }
0x170b   :  { %v2291_v8 = vpop.f32.mrb[8].mxu1 }
0x170c   :  { %v2979_v9 = vadd.f32 %v2291_v8, %v2074_v7  ;;  %v1097_v11 = vpop.f32.mrb[9].mxu1 }
0x170d   :  { %v2981_v12 = vadd.f32 %v2074_v7, %v1097_v11 }
0x170f   :  { %v1176_v14 = vadd.f32 %v1172_v4, %v2981_v12 }
0x1711   :  { %2575 = vtanh.f32 %v1176_v14  ;;  %v2077_v17 = vmul.f32 -1.442695, %v1176_v14 }
0x1713   :  { %2577 = vpow2.f32 %v2077_v17 }
0x171b   :  { %v2576_v16 = vpop.eup %2575 }
0x171c   :  { %1186 = vrot.lane.b32.xlu1 %v2576_v16, %s2718_s15 }
0x171d   :  { %v2578_v18 = vpop.eup %2577 }
0x171e   :  { %v1180_v19 = vadd.f32 1.0, %v2578_v18 }
0x1720   :  { %2579 = vrcp.f32 %v1180_v19 }
0x172a   :  { %v2580_v20 = vpop.eup %2579 }
0x172b   :  { %v1184_v23 = vmul.f32 0.0, %v2580_v20 }
0x178e   :  { %v1187_v21 = vpop.permute.xlu1 %1186 }
0x178f   :  { %v1189_v22 = vmul.f32 %v2580_v20, %v1187_v21 }
0x1791   :  { %1191 = vrot.lane.b32.xlu0 %v1189_v22, %s2718_s15 }
0x1803   :  { %v1192_v24 = vpop.permute.xlu0 %1191 }
0x1804   :  { %v1194_v25 = vadd.f32 %v1192_v24, %v1184_v23 }
0x1806   :  { %2581 = vtanh.f32 %v1194_v25  ;;  %v1288_v41 = vrot.slane %v1194_v25, 6 }
0x1810   :  { %v2582_v26 = vpop.eup %2581 }
0x1811   :  { %1197 = vrot.lane.b32.xlu1 %v2582_v26, %s2718_s15 }
0x1883   :  { %v1198_v27 = vpop.permute.xlu1 %1197 }
0x1884   :  { %v1200_v28 = vmul.f32 %v2580_v20, %v1198_v27 }
0x1886   :  { %1202 = vrot.lane.b32.xlu0 %v1200_v28, %s2719_s16 }
0x18f8   :  { %v1203_v29 = vpop.permute.xlu0 %1202 }
0x18f9   :  { %2312 = vmatmul.mubr.msk.f32.vlgmr.msra.gmra.mrb[10].mxu1 %vm153_vm3, %v1203_v29 }
0x18fa   :  { %2467 = vmatpush3.bf16.msra.mxu1 %v2944_v58  ;;  %2333 = vmatprep.mubr.msk.f32.mxu1 %vm2716_vm0, %v2717_v1 }
0x18fb   :  { %2468 = vmatprep.subr.bf16.mxu1 %v2715_v0 }
0x18fe   :  { %2470 = vmatpush3.bf16.msra.mxu1 %v2953_v61 }
0x18ff   :  { %2477 = vmatprep.subr.bf16.mxu1 %v2715_v0 }
0x19cc   :  { %v1272_v30 = vpop.f32.mrb[10].mxu1 }
0x19cd   :  { %v1277_v31 = vrot.slane %v1272_v30, 6  ;;  %v2313_v15 = vpop.f32.mrb[11].mxu1 }
0x19cf   :  { %v1279_v32 = vadd.f32 %v1277_v31, %v2981_v12 }
0x19d1   :  { %2583 = vtanh.f32 %v1279_v32  ;;  %v2079_v34 = vmul.f32 -1.442695, %v1279_v32 }
0x19d3   :  { %2585 = vpow2.f32 %v2079_v34 }
0x19db   :  { %v2584_v33 = vpop.eup %2583 }
0x19dc   :  { %1292 = vrot.lane.b32.xlu1 %v2584_v33, %s2718_s15 }
0x19dd   :  { %v2586_v36 = vpop.eup %2585 }
0x19de   :  { %v1283_v37 = vadd.f32 1.0, %v2586_v36 }
0x19e0   :  { %2587 = vrcp.f32 %v1283_v37 }
0x19ea   :  { %v2588_v38 = vpop.eup %2587 }
0x19eb   :  { %v1290_v42 = vmul.f32 %v2588_v38, %v1288_v41 }
0x1a4e   :  { %v1293_v39 = vpop.permute.xlu1 %1292 }
0x1a4f   :  { %v1295_v40 = vmul.f32 %v2588_v38, %v1293_v39 }
0x1a51   :  { %1297 = vrot.lane.b32.xlu0 %v1295_v40, %s2718_s15 }
0x1ac3   :  { %v1298_v43 = vpop.permute.xlu0 %1297 }
0x1ac4   :  { %v1300_v44 = vadd.f32 %v1298_v43, %v1290_v42 }
0x1ac6   :  { %2589 = vtanh.f32 %v1300_v44  ;;  %v1395_v60 = vrot.slane %v1300_v44, 6 }
0x1ad0   :  { %v2590_v45 = vpop.eup %2589 }
0x1ad1   :  { %1303 = vrot.lane.b32.xlu1 %v2590_v45, %s2718_s15 }
0x1b43   :  { %v1304_v46 = vpop.permute.xlu1 %1303 }
0x1b44   :  { %v1306_v47 = vmul.f32 %v2588_v38, %v1304_v46 }
0x1b46   :  { %v1308_v48 = vrot.slane %v1306_v47, 2 }
0x1b48   :  { %1309 = vrot.lane.b32.xlu0 %v1308_v48, %s2719_s16 }
0x1bba   :  { %v1310_v49 = vpop.permute.xlu0 %1309 }
0x1bbb   :  { %2323 = vmatmul.mubr.msk.f32.vlgmr.msra.gmra.mrb[12].mxu0 %vm153_vm3, %v1310_v49 }
0x1bbc   :  { %2473 = vmatpush3.bf16.msra.mxu0 %v2944_v58  ;;  %2344 = vmatprep.mubr.msk.f32.mxu0 %vm2716_vm0, %v2717_v1 }
0x1bbd   :  { %2474 = vmatprep.subr.bf16.mxu0 %v2715_v0 }
0x1bc0   :  { %2476 = vmatpush3.bf16.msra.mxu0 %v2953_v61 }
0x1bc1   :  { %2483 = vmatprep.subr.bf16.mxu0 %v2715_v0 }
0x1c8e   :  { %v1379_v13 = vpop.f32.mrb[12].mxu0 }
0x1c8f   :  { %v1384_v50 = vrot.slane %v1379_v13, 4  ;;  %v2324_v51 = vpop.f32.mrb[13].mxu0 }
0x1c91   :  { %v1386_v52 = vadd.f32 %v1384_v50, %v2981_v12 }
0x1c93   :  { %2591 = vtanh.f32 %v1386_v52  ;;  %v2081_v54 = vmul.f32 -1.442695, %v1386_v52 }
0x1c95   :  { %2593 = vpow2.f32 %v2081_v54 }
0x1c9d   :  { %v2592_v53 = vpop.eup %2591 }
0x1c9e   :  { %1399 = vrot.lane.b32.xlu1 %v2592_v53, %s2718_s15 }
0x1c9f   :  { %v2594_v55 = vpop.eup %2593 }
0x1ca0   :  { %v1390_v56 = vadd.f32 1.0, %v2594_v55 }
0x1ca2   :  { %2595 = vrcp.f32 %v1390_v56 }
0x1cac   :  { %v2596_v35 = vpop.eup %2595 }
0x1cad   :  { %v1397_v5 = vmul.f32 %v2596_v35, %v1395_v60 }
0x1d10   :  { %v1400_v57 = vpop.permute.xlu1 %1399 }
0x1d11   :  { %v1402_v59 = vmul.f32 %v2596_v35, %v1400_v57 }
0x1d13   :  { %1404 = vrot.lane.b32.xlu0 %v1402_v59, %s2718_s15 }
0x1d85   :  { %v1405_v62 = vpop.permute.xlu0 %1404 }
0x1d86   :  { %v1407_v63 = vadd.f32 %v1405_v62, %v1397_v5 }
0x1d88   :  { %2597 = vtanh.f32 %v1407_v63  ;;  %v1502_v23 = vrot.slane %v1407_v63, 6 }
0x1d92   :  { %v2598_v2 = vpop.eup %2597 }
0x1d93   :  { %1410 = vrot.lane.b32.xlu1 %v2598_v2, %s2718_s15 }
0x1e05   :  { %v1411_v10 = vpop.permute.xlu1 %1410 }
0x1e06   :  { %v1413_v3 = vmul.f32 %v2596_v35, %v1411_v10 }
0x1e08   :  { %v1415_v4 = vrot.slane %v1413_v3, 4 }
0x1e0a   :  { %1416 = vrot.lane.b32.xlu0 %v1415_v4, %s2719_s16 }
0x1e7c   :  { %v1417_v6 = vpop.permute.xlu0 %1416 }
0x1e7d   :  { %2334 = vmatmul.mubr.msk.f32.vlgmr.msra.gmra.mrb[12].mxu1 %vm153_vm3, %v1417_v6 }
0x1e7e   :  { %2479 = vmatpush3.bf16.msra.mxu1 %v2944_v58  ;;  %2355 = vmatprep.mubr.msk.f32.mxu1 %vm2716_vm0, %v2717_v1 }
0x1e7f   :  { %2480 = vmatprep.subr.bf16.mxu1 %v2715_v0 }
0x1e82   :  { %2482 = vmatpush3.bf16.msra.mxu1 %v2953_v61 }
0x1e83   :  { %2489 = vmatprep.subr.bf16.mxu1 %v2715_v0 }
0x1f50   :  { %v1486_v7 = vpop.f32.mrb[12].mxu1 }
0x1f51   :  { %v1491_v8 = vrot.slane %v1486_v7, 2  ;;  %v2335_v11 = vpop.f32.mrb[13].mxu1 }
0x1f53   :  { %v1493_v14 = vadd.f32 %v1491_v8, %v2981_v12 }
0x1f55   :  { %2599 = vtanh.f32 %v1493_v14  ;;  %v2083_v17 = vmul.f32 -1.442695, %v1493_v14 }
0x1f57   :  { %2601 = vpow2.f32 %v2083_v17 }
0x1f5f   :  { %v2600_v16 = vpop.eup %2599 }
0x1f60   :  { %1506 = vrot.lane.b32.xlu1 %v2600_v16, %s2718_s15 }
0x1f61   :  { %v2602_v18 = vpop.eup %2601 }
0x1f62   :  { %v1497_v19 = vadd.f32 1.0, %v2602_v18 }
0x1f64   :  { %2603 = vrcp.f32 %v1497_v19 }
0x1f6e   :  { %v2604_v20 = vpop.eup %2603 }
0x1f6f   :  { %v1504_v24 = vmul.f32 %v2604_v20, %v1502_v23 }
0x1fd2   :  { %v1507_v21 = vpop.permute.xlu1 %1506 }
0x1fd3   :  { %v1509_v22 = vmul.f32 %v2604_v20, %v1507_v21 }
0x1fd5   :  { %1511 = vrot.lane.b32.xlu0 %v1509_v22, %s2718_s15 }
0x2047   :  { %v1512_v25 = vpop.permute.xlu0 %1511 }
0x2048   :  { %v1514_v26 = vadd.f32 %v1512_v25, %v1504_v24 }
0x204a   :  { %2605 = vtanh.f32 %v1514_v26  ;;  %v1606_v41 = vrot.slane %v1514_v26, 6 }
0x2054   :  { %v2606_v12 = vpop.eup %2605 }
0x2055   :  { %1517 = vrot.lane.b32.xlu1 %v2606_v12, %s2718_s15 }
0x20c7   :  { %v1518_v27 = vpop.permute.xlu1 %1517 }
0x20c8   :  { %v1520_v28 = vmul.f32 %v2604_v20, %v1518_v27 }
0x20ca   :  { %v1522_v29 = vrot.slane %v1520_v28, 6 }
0x20cc   :  { %1523 = vrot.lane.b32.xlu0 %v1522_v29, %s2719_s16 }
0x213e   :  { %v1524_v30 = vpop.permute.xlu0 %1523 }
0x213f   :  { %2345 = vmatmul.mubr.msk.f32.vlgmr.msra.gmra.mrb[14].mxu0 %vm153_vm3, %v1524_v30 }
0x2140   :  { %2485 = vmatpush3.bf16.msra.mxu0 %v2944_v58  ;;  %2366 = vmatprep.mubr.msk.f32.mxu0 %vm2716_vm0, %v2717_v1 }
0x2141   :  { %2486 = vmatprep.subr.bf16.mxu0 %v2715_v0 }
0x2144   :  { %2488 = vmatpush3.bf16.msra.mxu0 %v2953_v61 }
0x2145   :  { %2495 = vmatprep.subr.bf16.mxu0 %v2715_v0 }
0x2212   :  { %v1593_v31 = vpop.f32.mrb[14].mxu0 }
0x2213   :  { %v1597_v15 = vadd.f32 %v1593_v31, %v2979_v9  ;;  %v2346_v32 = vpop.f32.mrb[15].mxu0 }
0x2215   :  { %2607 = vtanh.f32 %v1597_v15  ;;  %v2085_v34 = vmul.f32 -1.442695, %v1597_v15 }
0x2217   :  { %2609 = vpow2.f32 %v2085_v34 }
0x221f   :  { %v2608_v33 = vpop.eup %2607 }
0x2220   :  { %1610 = vrot.lane.b32.xlu1 %v2608_v33, %s2718_s15 }
0x2221   :  { %v2610_v36 = vpop.eup %2609 }
0x2222   :  { %v1601_v37 = vadd.f32 1.0, %v2610_v36 }
0x2224   :  { %2611 = vrcp.f32 %v1601_v37 }
0x222e   :  { %v2612_v38 = vpop.eup %2611 }
0x222f   :  { %v1608_v42 = vmul.f32 %v2612_v38, %v1606_v41 }
0x2292   :  { %v1611_v39 = vpop.permute.xlu1 %1610 }
0x2293   :  { %v1613_v40 = vmul.f32 %v2612_v38, %v1611_v39 }
0x2295   :  { %1615 = vrot.lane.b32.xlu0 %v1613_v40, %s2718_s15 }
0x2307   :  { %v1616_v43 = vpop.permute.xlu0 %1615 }
0x2308   :  { %v1618_v44 = vadd.f32 %v1616_v43, %v1608_v42  ;;  %v1946_v42 = vld [vmem:[%s3095_s5 + $0x8] sm:$0xff]  ;;  %v1947_v43 = vld [vmem:[%s3095_s5 + $0x10] sm:$0xff] }
0x230a   :  { %2613 = vtanh.f32 %v1618_v44 }
0x2314   :  { %v2614_v45 = vpop.eup %2613 }
0x2315   :  { %1621 = vrot.lane.b32.xlu1 %v2614_v45, %s2718_s15  ;;  %v1948_v45 = vld [vmem:[%s3095_s5 + $0x18] sm:$0xff] }
0x2387   :  { %v1622_v46 = vpop.permute.xlu1 %1621 }
0x2388   :  { %v1624_v47 = vmul.f32 %v2612_v38, %v1622_v46  ;;  %v2499_v46 = vpack.c.bf16 %v1948_v45, %v1947_v43 }
0x238a   :  { %1626 = vrot.lane.b32.xlu0 %v1624_v47, %s2719_s16 }
0x23fc   :  { %v1627_v48 = vpop.permute.xlu0 %1626 }
0x23fd   :  { %2356 = vmatmul.mubr.msk.f32.vlgmr.msra.gmra.mrb[14].mxu1 %vm153_vm3, %v1627_v48 }
0x23fe   :  { %2491 = vmatpush3.bf16.msra.mxu1 %v2944_v58  ;;  %2377 = vmatprep.mubr.msk.f32.mxu1 %vm2716_vm0, %v2717_v1 }
0x23ff   :  { %2492 = vmatprep.subr.bf16.mxu1 %v2715_v0 }
0x2402   :  { %2494 = vmatpush3.bf16.msra.mxu1 %v2953_v61  ;;  %v1712_v61 = vrot.slane %v1618_v44, 6 }
0x24d0   :  { %v1696_v49 = vpop.f32.mrb[14].mxu1 }
0x24d1   :  { %v1701_v13 = vrot.slane %v1696_v49, 6  ;;  %v2357_v50 = vpop.f32.mrb[15].mxu1 }
0x24d3   :  { %v1703_v51 = vadd.f32 %v1701_v13, %v2979_v9 }
0x24d5   :  { %2615 = vtanh.f32 %v1703_v51  ;;  %v2087_v53 = vmul.f32 -1.442695, %v1703_v51  ;;  %v2092_v51 = vld [vmem:[%s3096_s6] ss:$0 sm:$0xff] }
0x24d7   :  { %2617 = vpow2.f32 %v2087_v53 }
0x24df   :  { %v2616_v52 = vpop.eup %2615 }
0x24e0   :  { %1716 = vrot.lane.b32.xlu1 %v2616_v52, %s2718_s15 }
0x24e1   :  { %v2618_v54 = vpop.eup %2617 }
0x24e2   :  { %v1707_v58 = vadd.f32 1.0, %v2618_v54 }
0x24e4   :  { %2619 = vrcp.f32 %v1707_v58 }
0x24ee   :  { %v2620_v55 = vpop.eup %2619 }
0x24ef   :  { %v1714_v57 = vmul.f32 %v2620_v55, %v1712_v61 }
0x2552   :  { %v1717_v56 = vpop.permute.xlu1 %1716 }
0x2553   :  { %v1719_v35 = vmul.f32 %v2620_v55, %v1717_v56 }
0x2555   :  { %1721 = vrot.lane.b32.xlu0 %v1719_v35, %s2718_s15 }
0x25c7   :  { %v1722_v59 = vpop.permute.xlu0 %1721 }
0x25c8   :  { %v1724_v60 = vadd.f32 %v1722_v59, %v1714_v57 }
0x25ca   :  { %2621 = vtanh.f32 %v1724_v60 }
0x25d4   :  { %v2622_v5 = vpop.eup %2621 }
0x25d5   :  { %1727 = vrot.lane.b32.xlu1 %v2622_v5, %s2718_s15 }
0x2647   :  { %v1728_v62 = vpop.permute.xlu1 %1727 }
0x2648   :  { %v1730_v63 = vmul.f32 %v2620_v55, %v1728_v62 }
0x264a   :  { %v1732_v2 = vrot.slane %v1730_v63, 2 }
0x264c   :  { %1733 = vrot.lane.b32.xlu0 %v1732_v2, %s2719_s16 }
0x26be   :  { %v1734_v10 = vpop.permute.xlu0 %1733 }
0x26bf   :  { %2367 = vmatmul.mubr.msk.f32.vlgmr.msra.gmra.mrb[16].mxu0 %vm153_vm3, %v1734_v10 }
0x26c0   :  { %2388 = vmatprep.mubr.msk.f32.mxu0 %vm2716_vm0, %v2717_v1  ;;  %v1819_v1 = vrot.slane %v1724_v60, 6 }
0x2792   :  { %v1803_v3 = vpop.f32.mrb[16].mxu0 }
0x2793   :  { %v1808_v4 = vrot.slane %v1803_v3, 4  ;;  %v2368_v6 = vpop.f32.mrb[17].mxu0 }
0x2795   :  { %v1810_v7 = vadd.f32 %v1808_v4, %v2979_v9 }
0x2797   :  { %2623 = vtanh.f32 %v1810_v7  ;;  %v2089_v11 = vmul.f32 -1.442695, %v1810_v7 }
0x2799   :  { %2625 = vpow2.f32 %v2089_v11 }
0x27a1   :  { %v2624_v8 = vpop.eup %2623 }
0x27a2   :  { %1823 = vrot.lane.b32.xlu1 %v2624_v8, %s2718_s15 }
0x27a3   :  { %v2626_v14 = vpop.eup %2625 }
0x27a4   :  { %v1814_v16 = vadd.f32 1.0, %v2626_v14 }
0x27a6   :  { %2627 = vrcp.f32 %v1814_v16 }
0x27b0   :  { %v2628_v17 = vpop.eup %2627 }
0x27b1   :  { %v1821_v20 = vmul.f32 %v2628_v17, %v1819_v1 }
0x2814   :  { %v1824_v18 = vpop.permute.xlu1 %1823 }
0x2815   :  { %v1826_v19 = vmul.f32 %v2628_v17, %v1824_v18 }
0x2817   :  { %1828 = vrot.lane.b32.xlu0 %v1826_v19, %s2718_s15 }
0x2889   :  { %v1829_v21 = vpop.permute.xlu0 %1828 }
0x288a   :  { %v1831_v22 = vadd.f32 %v1829_v21, %v1821_v20 }
0x288c   :  { %2629 = vtanh.f32 %v1831_v22  ;;  %v1926_v38 = vrot.slane %v1831_v22, 6 }
0x2896   :  { %v2630_v23 = vpop.eup %2629 }
0x2897   :  { %1834 = vrot.lane.b32.xlu1 %v2630_v23, %s2718_s15 }
0x2909   :  { %v1835_v24 = vpop.permute.xlu1 %1834 }
0x290a   :  { %v1837_v25 = vmul.f32 %v2628_v17, %v1835_v24 }
0x290c   :  { %v1839_v26 = vrot.slane %v1837_v25, 4 }
0x290e   :  { %1840 = vrot.lane.b32.xlu0 %v1839_v26, %s2719_s16 }
0x2980   :  { %v1841_v12 = vpop.permute.xlu0 %1840 }
0x2981   :  { %2378 = vmatmul.mubr.msk.f32.vlgmr.msra.gmra.mrb[16].mxu1 %vm153_vm3, %v1841_v12 }
0x2a54   :  { %v1910_v27 = vpop.f32.mrb[16].mxu1 }
0x2a55   :  { %v1915_v28 = vrot.slane %v1910_v27, 2  ;;  %v2379_v29 = vpop.f32.mrb[17].mxu1 }
0x2a57   :  { %v1917_v30 = vadd.f32 %v1915_v28, %v2979_v9  ;;  %v1945_v9 = vld [vmem:[%s3095_s5] sm:$0xff]  ;;  %s2720_s5 = smov [#allocation7]  }
0x2a58   :  { %v2496_v44 = vpack.c.bf16 %v1946_v42, %v1945_v9  ;;  %s2040_s10 = sshll.u32 %s2720_s5, 4  ;;  %s2041_s10 = int_to_ptr.vmem [resolvable:$true] %s2040_s10 }
0x2a59   :  { %2631 = vtanh.f32 %v1917_v30  ;;  %v2091_v15 = vmul.f32 -1.442695, %v1917_v30  ;;  %s2683_s11 = scalar_lea.vmem %s2041_s10, 32  ;;  %p2688_p3 = scmp.lt.s32.totalorder %s2041_s10, %s2041_s10 }
0x2a5a   :  { %2497 = vmatpush3.bf16.msra.mxu0 %v2496_v44  ;;  %p2684_p2 = scmp.ne.s32.totalorder %s2041_s10, %s2683_s11  ;;  %p2689_p4 = scmp.lt.s32.totalorder %s2683_s11, %s2683_s11 }
0x2a5b   :  { %2633 = vpow2.f32 %v2091_v15  ;;  %2498 = vmatprep.subr.bf16.mxu0 %v2715_v0 }
0x2a5c   :  { %p2690_p5 = por %p2689_p4, %p2688_p3 }
0x2a5e   :  { %2500 = vmatpush3.bf16.msra.mxu0 %v2499_v46  ;;  %p2691_p6 = pnand %p2690_p5, %p2684_p2 }
0x2a63   :  { %v2632_v31 = vpop.eup %2631 }
0x2a64   :  { %1930 = vrot.lane.b32.xlu1 %v2632_v31, %s2718_s15 }
0x2a65   :  { %v2634_v32 = vpop.eup %2633 }
0x2a66   :  { %v1921_v33 = vadd.f32 1.0, %v2634_v32 }
0x2a68   :  { %2635 = vrcp.f32 %v1921_v33 }
0x2a72   :  { %v2636_v34 = vpop.eup %2635 }
0x2a73   :  { %v1928_v39 = vmul.f32 %v2636_v34, %v1926_v38 }
0x2ad6   :  { %v1931_v36 = vpop.permute.xlu1 %1930 }
0x2ad7   :  { %v1933_v37 = vmul.f32 %v2636_v34, %v1931_v36 }
0x2ad9   :  { %1935 = vrot.lane.b32.xlu0 %v1933_v37, %s2718_s15 }
0x2b4b   :  { %v1936_v40 = vpop.permute.xlu0 %1935 }
0x2b4c   :  { %v1938_v41 = vadd.f32 %v1936_v40, %v1928_v39 }
0x2b4e   :  { %2637 = vtanh.f32 %v1938_v41 }
0x2b58   :  { %v2638_v47 = vpop.eup %2637 }
0x2b59   :  { %1941 = vrot.lane.b32.xlu1 %v2638_v47, %s2718_s15 }
0x2bcb   :  { %v1942_v48 = vpop.permute.xlu1 %1941 }
0x2bcc   :  { %v1944_v49 = vmul.f32 %v2636_v34, %v1942_v48 }
0x2bce   :  { %v1957_v13 = vrot.slane %v1944_v49, 6 }
0x2bd0   :  { %1958 = vrot.lane.b32.xlu0 %v1957_v13, %s2719_s16 }
0x2c42   :  { %v1959_v50 = vpop.permute.xlu0 %1958 }
0x2c43   :  { %2389 = vmatmul.mubr.msk.f32.vlgmr.msra.gmra.mrb[18].mxu0 %vm153_vm3, %v1959_v50 }
0x2d16   :  { %v2028_v52 = vpop.f32.mrb[18].mxu0 }
0x2d17   :  { %v2029_v0 = vadd.f32 %v2092_v51, %v2028_v52  ;;  %v2390_v53 = vpop.f32.mrb[19].mxu0 }
0x2d19   :  { %2033 = vst.msk [vmem:[#allocation7] sm:$0x3] %vm2032_vm6, %v2029_v0 }
0x2d1a   :  { %2694 = shalt.err (!%p2691_p6)
}
0x2d1b   :  { %s2695_s0 = scalar_lea.hbm %s3097_s7, 32 }
0x2d1c   :  { %p2696_p7 = scmp.ne.s32.totalorder %s3097_s7, %s2695_s0  ;;  %p2699_p8 = scmp.lt.u32.totalorder %s2695_s0, %s3097_s7 }
0x2d1e   :  { %p2701_p9 = pnand %p2699_p8, %p2696_p7 }
0x2d20   :  { %2704 = shalt.err (!%p2701_p9)
}
0x2d21   :  { %2043 = dma.vmem_to_hbm [thread:$0]  %s2041_s10, 32, %s3097_s7, [#allocation4]  }
0x2d22   :  { %2709 = dma.done.wait [#allocation4], 32  }
0x2d23   :  { %2710 = vsyncadd [#allocation4], 4294967264 }
0x2d24   :  { %2047 = vsyncpa [#allocation3], 1 }
0x2d25   :  { %2048 = vsyncpa [#allocation6], 1 }
0x2d26   :  { %2049 = vsyncpa [#allocation4], 1 }

</bundles_post_ra>
